<compile_context>
chip_gen: v7x
topology: tpu7x:2x2x1
jax: 0.10.0
libtpu: 0.0.40
codegen_flags: <defaults>
</compile_context>

<pallas_src>
import functools

import jax
import jax.numpy as jnp
import numpy as np
from jax.experimental import pallas as pl
from jax.experimental.pallas import tpu as pltpu

# TODO(synk): the frozen pretrained BERT encoder (self.bert) has no clean
# Pallas equivalent here; the kernel takes its last hidden states as input.


def _encoder_text_kernel(h_ref, wbig_ref, wmap_ref, bias_ref, mask_ref,
                         word_ref, txt_ref, *, L):
    M, _ = h_ref.shape                      # M = Bt * L token rows this step
    E = wmap_ref.shape[1]
    Bt = M // L

    # One wide MXU matmul for fc + all conv taps: (M,H) @ (H,7E) -> f32 acc.
    y = jnp.dot(h_ref[...], wbig_ref[...], preferred_element_type=jnp.float32)

    biases = bias_ref[...]                  # (5, E) f32
    b_fc, b1, b2, b3, b_map = (biases[0:1], biases[1:2], biases[2:3],
                               biases[3:4], biases[4:5])

    # +/-1 sequence shifts applied post-matmul on the narrow (M, E) slices.
    # The roll rides the XLU; rows that crossed a sequence boundary are zeroed
    # with a precomputed (M, 1) 0/1 mask (single VPU multiply each).
    mask = mask_ref[...]                    # (M, 2) f32
    keep_up, keep_dn = mask[:, 0:1], mask[:, 1:2]

    def shift_up(v):        # v[t] <- v[t+1] within a sequence, 0 at t = L-1
        return pltpu.roll(v, shift=M - 1, axis=0) * keep_up

    def shift_down(v):      # v[t] <- v[t-1] within a sequence, 0 at t = 0
        return pltpu.roll(v, shift=1, axis=0) * keep_dn

    x_emb = y[:, 0:E] + b_fc                                              # fc
    x1 = jnp.maximum(y[:, E:2 * E] + b1, 0.0)                             # conv K=1
    x2 = jnp.maximum(y[:, 2 * E:3 * E] + shift_up(y[:, 3 * E:4 * E]) + b2, 0.0)
    x3 = jnp.maximum(shift_down(y[:, 4 * E:5 * E]) + y[:, 5 * E:6 * E]
                     + shift_up(y[:, 6 * E:7 * E]) + b3, 0.0)

    # Fused mapping matmul: lane-concat x1|x2|x3 (128-aligned offsets), append
    # the Bt per-sequence max-pooled rows along sublanes, one K=3E matmul.
    word_act = jnp.concatenate([x1, x2, x3], axis=1)                      # (M, 3E)
    pooled = jnp.max(word_act.reshape(Bt, L, 3 * E), axis=1)              # (Bt, 3E)
    xc = jnp.concatenate([word_act, pooled], axis=0).astype(jnp.bfloat16)
    s = jnp.dot(xc, wmap_ref[...], preferred_element_type=jnp.float32)    # (M+Bt, E)

    word = s[0:M] + b_map + x_emb                                         # (M, E)
    txt = (s[M:M + Bt] + b_map
           + jnp.mean(x_emb.reshape(Bt, L, E), axis=1))                   # (Bt, E)

    def l2norm(v):                          # F.normalize (eps = 1e-12 on norm)
        ss = jnp.sum(v * v, axis=-1, keepdims=True)
        return v * jax.lax.rsqrt(jnp.maximum(ss, 1e-24))

    word_ref[...] = l2norm(word)
    txt_ref[...] = l2norm(txt)


@jax.jit
def encoder_text_forward(h, params):
    """h: (B, L, H) BERT last hidden states.  Returns (txt_emb (B,E), word_emb (B,L,E))."""
    B, L, H = h.shape
    E = params["b_fc"].shape[0]

    # Sequences per grid step: Bt = 8 (M = Bt*L = 128 MXU rows at demo shapes)
    # when it divides B; keeps the grid even so both v7x TCs get work while
    # only B/Bt serial steps are paid on single-TC v5e/v6e.
    Bt = 8 if B % 8 == 0 else (B if B <= 8 else
                               next(c for c in (4, 2, 1) if B % c == 0))
    M = Bt * L

    # Fuse fc + conv-tap weights into one (H, 7E) matrix (output-axis concat).
    wbig = jnp.concatenate(
        [params["w_fc"].T,                       # fc
         params["w_conv1"][:, 0, 0, :].T,        # conv K=1
         params["w_conv2"][:, 0, 0, :].T,        # conv K=2, taps t and t+1
         params["w_conv2"][:, 0, 1, :].T,
         params["w_conv3"][:, 0, 0, :].T,        # conv K=3, taps t-1, t, t+1
         params["w_conv3"][:, 0, 1, :].T,
         params["w_conv3"][:, 0, 2, :].T],
        axis=1).astype(jnp.bfloat16)             # (H, 7E)
    wmap = params["w_map"].T.astype(jnp.bfloat16)                          # (3E, E)
    biases = jnp.stack(
        [params["b_fc"], params["b_conv1"], params["b_conv2"],
         params["b_conv3"], params["b_map"]], axis=0).astype(jnp.float32)  # (5, E)

    # (M, 2) 0/1 row masks for the post-matmul sequence shifts (tiny constant):
    # col 0 keeps rows with pos-in-seq != L-1 (shift_up), col 1 != 0 (shift_down).
    pos = np.arange(M) % L
    shift_mask = jnp.asarray(
        np.stack([pos != L - 1, pos != 0], axis=1).astype(np.float32))     # (M, 2)

    h_flat = h.reshape(B * L, H).astype(jnp.bfloat16)

    # Explicit VMEM budget: double-buffered blocks + intermediate headroom.
    block_bytes = (M * H * 2 + H * 7 * E * 2 + 3 * E * E * 2 + 8 * E * 4
                   + M * 128 * 4 + M * E * 4 + Bt * E * 4)
    interm_bytes = M * 7 * E * 4 + 6 * M * E * 4 + (M + Bt) * 3 * E * 6
    vmem_limit = int(min(max(2 * block_bytes + interm_bytes + (4 << 20),
                             16 << 20), 64 << 20))

    cost = pl.CostEstimate(
        flops=int(2 * B * L * H * 7 * E + 2 * (B * L + B) * 3 * E * E),
        transcendentals=int(B * (L + 1)),
        bytes_accessed=int(h_flat.size * 2 + wbig.size * 2 + wmap.size * 2
                           + biases.size * 4 + shift_mask.size * 4
                           + B * L * E * 4 + B * E * 4))

    # NOTE: at production weight sizes (H=768, E=1024) the grid-invariant
    # weight inputs (wbig/wmap/biases) should be single-buffered
    # (pipeline_mode=pl.Buffered(1)) to stay inside v7x's 64 MiB VMEM; at these
    # demo sizes double-buffering them costs <1 MiB, so the default is kept.
    word_flat, txt = pl.pallas_call(
        functools.partial(_encoder_text_kernel, L=L),
        out_shape=(jax.ShapeDtypeStruct((B * L, E), jnp.float32),
                   jax.ShapeDtypeStruct((B, E), jnp.float32)),
        grid=(B // Bt,),
        in_specs=[
            pl.BlockSpec((M, H), lambda b: (b, 0)),            # Bt sequences of tokens
            pl.BlockSpec((H, 7 * E), lambda b: (0, 0)),        # fused fc + conv weights
            pl.BlockSpec((3 * E, E), lambda b: (0, 0)),        # mapping weight
            pl.BlockSpec((5, E), lambda b: (0, 0)),            # stacked biases
            pl.BlockSpec((M, 2), lambda b: (0, 0)),            # shift boundary masks
        ],
        out_specs=(pl.BlockSpec((M, E), lambda b: (b, 0)),
                   pl.BlockSpec((Bt, E), lambda b: (b, 0))),
        compiler_params=pltpu.CompilerParams(
            dimension_semantics=("parallel",),
            vmem_limit_bytes=vmem_limit),
        cost_estimate=cost,
    )(h_flat, wbig, wmap, biases, shift_mask)

    return txt, word_flat.reshape(B, L, E)


def reference_forward(h, params):
    """Pure-JAX (f32) replica of the PyTorch forward (eval mode) for verification."""
    B, L, H = h.shape
    x = h[:, None, :, :]                                     # NCHW (B,1,L,H)

    def conv_relu(xin, w, b):
        y = jax.lax.conv_general_dilated(
            xin, w, window_strides=(1, 1), padding="VALID",
            dimension_numbers=("NCHW", "OIHW", "NCHW"))
        return jax.nn.relu(y + b[None, :, None, None])[..., 0]   # (B, E, L)

    x1 = conv_relu(x, params["w_conv1"], params["b_conv1"])
    x2 = conv_relu(jnp.pad(x, ((0, 0), (0, 0), (0, 1), (0, 0))),
                   params["w_conv2"], params["b_conv2"])
    x3 = conv_relu(jnp.pad(x, ((0, 0), (0, 0), (1, 1), (0, 0))),
                   params["w_conv3"], params["b_conv3"])
    x_emb = h @ params["w_fc"].T + params["b_fc"]            # (B, L, E)

    xc = jnp.swapaxes(jnp.concatenate([x1, x2, x3], axis=1), 1, 2)  # (B, L, 3E)
    word = xc @ params["w_map"].T + params["b_map"] + x_emb

    pooled = jnp.concatenate([x1.max(-1), x2.max(-1), x3.max(-1)], axis=1)   # (B, 3E)
    txt = pooled @ params["w_map"].T + params["b_map"] + x_emb.mean(1)

    def l2(v):
        n = jnp.sqrt(jnp.sum(v * v, axis=-1, keepdims=True))
        return v / jnp.maximum(n, 1e-12)

    return l2(txt), l2(word)


def init_params(key, bert_hid, embed_size):
    ks = jax.random.split(key, 10)
    s = 0.05
    return {
        "w_fc":    s * jax.random.normal(ks[0], (embed_size, bert_hid), jnp.float32),
        "b_fc":    s * jax.random.normal(ks[1], (embed_size,), jnp.float32),
        "w_conv1": s * jax.random.normal(ks[2], (embed_size, 1, 1, bert_hid), jnp.float32),
        "b_conv1": s * jax.random.normal(ks[3], (embed_size,), jnp.float32),
        "w_conv2": s * jax.random.normal(ks[4], (embed_size, 1, 2, bert_hid), jnp.float32),
        "b_conv2": s * jax.random.normal(ks[5], (embed_size,), jnp.float32),
        "w_conv3": s * jax.random.normal(ks[6], (embed_size, 1, 3, bert_hid), jnp.float32),
        "b_conv3": s * jax.random.normal(ks[7], (embed_size,), jnp.float32),
        "w_map":   s * jax.random.normal(ks[8], (embed_size, 3 * embed_size), jnp.float32),
        "b_map":   s * jax.random.normal(ks[9], (embed_size,), jnp.float32),
    }


if __name__ == "__main__":
    # Small but MXU-friendly demo shapes: batch=16 sequences (Bt=8 per grid
    # step -> M=128 matmul rows; grid of 2 "parallel" steps so both v7x TCs
    # get work), seq=16, bert hidden=128, embed=128 (lane/sublane dense).
    B, L, H, E = 16, 16, 128, 128
    key = jax.random.PRNGKey(0)
    k_h, k_p = jax.random.split(key)
    h = jax.random.normal(k_h, (B, L, H), jnp.float32)   # synthetic BERT hidden states
    params = init_params(k_p, H, E)

    txt_emb, word_emb = encoder_text_forward(h, params)
    jax.block_until_ready((txt_emb, word_emb))

    # f32 reference vs bf16-input / f32-accumulation kernel -> loose tolerance.
    txt_ref, word_ref = reference_forward(h, params)
    np.testing.assert_allclose(np.asarray(txt_emb), np.asarray(txt_ref), rtol=3e-2, atol=3e-2)
    np.testing.assert_allclose(np.asarray(word_emb), np.asarray(word_ref), rtol=3e-2, atol=3e-2)

    print("KERNEL_OK")
</pallas_src>

<mosaic_0001>
module attributes {stable_mosaic.version = 11 : i64} {
  func.func @_encoder_text_kernel(%arg0: i32, %arg1: memref<128x128xbf16, #tpu.memory_space<vmem>>, %arg2: memref<128x896xbf16, #tpu.memory_space<vmem>>, %arg3: memref<384x128xbf16, #tpu.memory_space<vmem>>, %arg4: memref<5x128xf32, #tpu.memory_space<vmem>>, %arg5: memref<128x2xf32, #tpu.memory_space<vmem>>, %arg6: memref<128x128xf32, #tpu.memory_space<vmem>>, %arg7: memref<8x128xf32, #tpu.memory_space<vmem>>) attributes {dimension_semantics = [#tpu.dimension_semantics<parallel>], iteration_bounds = array<i64: 2>, scalar_prefetch = 0 : i64, scratch_operands = 0 : i64, tpu.core_type = #tpu.core_type<tc>, window_params = [{transform_indices = @transform_0, window_bounds = array<i64: 128, 128>}, {pipeline_mode = #tpu.pipeline_mode<synchronous>, transform_indices = @transform_1, window_bounds = array<i64: 128, 896>}, {pipeline_mode = #tpu.pipeline_mode<synchronous>, transform_indices = @transform_2, window_bounds = array<i64: 384, 128>}, {pipeline_mode = #tpu.pipeline_mode<synchronous>, transform_indices = @transform_3, window_bounds = array<i64: 5, 128>}, {pipeline_mode = #tpu.pipeline_mode<synchronous>, transform_indices = @transform_4, window_bounds = array<i64: 128, 2>}, {transform_indices = @transform_5, window_bounds = array<i64: 128, 128>}, {transform_indices = @transform_6, window_bounds = array<i64: 8, 128>}]} {
    %c0 = arith.constant 0 : index
    %c0_0 = arith.constant 0 : index
    %0 = vector.load %arg1[%c0, %c0_0] : memref<128x128xbf16, #tpu.memory_space<vmem>>, vector<128x128xbf16>
    %c0_1 = arith.constant 0 : index
    %c0_2 = arith.constant 0 : index
    %1 = vector.load %arg2[%c0_1, %c0_2] : memref<128x896xbf16, #tpu.memory_space<vmem>>, vector<128x896xbf16>
    %cst = arith.constant dense<0.000000e+00> : vector<128x896xf32>
    %2 = tpu.matmul %0, %1, %cst {dimension_numbers = #tpu.dot_dimension_numbers<[1], [0], [0], [1], [0, 0, 1, 1], [], []>} : vector<128x128xbf16>, vector<128x896xbf16>, vector<128x896xf32> -> vector<128x896xf32>
    %c0_3 = arith.constant 0 : index
    %c0_4 = arith.constant 0 : index
    %3 = vector.load %arg4[%c0_3, %c0_4] : memref<5x128xf32, #tpu.memory_space<vmem>>, vector<5x128xf32>
    %4 = vector.extract_strided_slice %3 {offsets = [0, 0], sizes = [1, 128], strides = [1, 1]} : vector<5x128xf32> to vector<1x128xf32>
    %5 = vector.extract_strided_slice %3 {offsets = [1, 0], sizes = [1, 128], strides = [1, 1]} : vector<5x128xf32> to vector<1x128xf32>
    %6 = vector.extract_strided_slice %3 {offsets = [2, 0], sizes = [1, 128], strides = [1, 1]} : vector<5x128xf32> to vector<1x128xf32>
    %7 = vector.extract_strided_slice %3 {offsets = [3, 0], sizes = [1, 128], strides = [1, 1]} : vector<5x128xf32> to vector<1x128xf32>
    %8 = vector.extract_strided_slice %3 {offsets = [4, 0], sizes = [1, 128], strides = [1, 1]} : vector<5x128xf32> to vector<1x128xf32>
    %c0_5 = arith.constant 0 : index
    %c0_6 = arith.constant 0 : index
    %9 = vector.load %arg5[%c0_5, %c0_6] : memref<128x2xf32, #tpu.memory_space<vmem>>, vector<128x2xf32>
    %10 = vector.extract_strided_slice %9 {offsets = [0, 0], sizes = [128, 1], strides = [1, 1]} : vector<128x2xf32> to vector<128x1xf32>
    %11 = vector.extract_strided_slice %9 {offsets = [0, 1], sizes = [128, 1], strides = [1, 1]} : vector<128x2xf32> to vector<128x1xf32>
    %12 = vector.extract_strided_slice %2 {offsets = [0, 0], sizes = [128, 128], strides = [1, 1]} : vector<128x896xf32> to vector<128x128xf32>
    %13 = vector.broadcast %4 : vector<1x128xf32> to vector<128x128xf32>
    %14 = arith.addf %12, %13 : vector<128x128xf32>
    %15 = vector.extract_strided_slice %2 {offsets = [0, 128], sizes = [128, 128], strides = [1, 1]} : vector<128x896xf32> to vector<128x128xf32>
    %16 = vector.broadcast %5 : vector<1x128xf32> to vector<128x128xf32>
    %17 = arith.addf %15, %16 : vector<128x128xf32>
    %cst_7 = arith.constant 0.000000e+00 : f32
    %18 = vector.broadcast %cst_7 : f32 to vector<128x128xf32>
    %19 = arith.maximumf %17, %18 : vector<128x128xf32>
    %20 = vector.extract_strided_slice %2 {offsets = [0, 256], sizes = [128, 128], strides = [1, 1]} : vector<128x896xf32> to vector<128x128xf32>
    %21 = vector.extract_strided_slice %2 {offsets = [0, 384], sizes = [128, 128], strides = [1, 1]} : vector<128x896xf32> to vector<128x128xf32>
    %c127_i32 = arith.constant 127 : i32
    %22 = tpu.dynamic_rotate %21 by %c127_i32 dim 0 : vector<128x128xf32>, i32 -> vector<128x128xf32>
    %23 = vector.broadcast %10 : vector<128x1xf32> to vector<128x128xf32>
    %24 = arith.mulf %22, %23 : vector<128x128xf32>
    %25 = arith.addf %20, %24 : vector<128x128xf32>
    %26 = vector.broadcast %6 : vector<1x128xf32> to vector<128x128xf32>
    %27 = arith.addf %25, %26 : vector<128x128xf32>
    %cst_8 = arith.constant 0.000000e+00 : f32
    %28 = vector.broadcast %cst_8 : f32 to vector<128x128xf32>
    %29 = arith.maximumf %27, %28 : vector<128x128xf32>
    %30 = vector.extract_strided_slice %2 {offsets = [0, 512], sizes = [128, 128], strides = [1, 1]} : vector<128x896xf32> to vector<128x128xf32>
    %c1_i32 = arith.constant 1 : i32
    %31 = tpu.dynamic_rotate %30 by %c1_i32 dim 0 : vector<128x128xf32>, i32 -> vector<128x128xf32>
    %32 = vector.broadcast %11 : vector<128x1xf32> to vector<128x128xf32>
    %33 = arith.mulf %31, %32 : vector<128x128xf32>
    %34 = vector.extract_strided_slice %2 {offsets = [0, 640], sizes = [128, 128], strides = [1, 1]} : vector<128x896xf32> to vector<128x128xf32>
    %35 = arith.addf %33, %34 : vector<128x128xf32>
    %36 = vector.extract_strided_slice %2 {offsets = [0, 768], sizes = [128, 128], strides = [1, 1]} : vector<128x896xf32> to vector<128x128xf32>
    %c127_i32_9 = arith.constant 127 : i32
    %37 = tpu.dynamic_rotate %36 by %c127_i32_9 dim 0 : vector<128x128xf32>, i32 -> vector<128x128xf32>
    %38 = vector.broadcast %10 : vector<128x1xf32> to vector<128x128xf32>
    %39 = arith.mulf %37, %38 : vector<128x128xf32>
    %40 = arith.addf %35, %39 : vector<128x128xf32>
    %41 = vector.broadcast %7 : vector<1x128xf32> to vector<128x128xf32>
    %42 = arith.addf %40, %41 : vector<128x128xf32>
    %cst_10 = arith.constant 0.000000e+00 : f32
    %43 = vector.broadcast %cst_10 : f32 to vector<128x128xf32>
    %44 = arith.maximumf %42, %43 : vector<128x128xf32>
    %45 = tpu.concatenate %19, %29, %44 in 1 : vector<128x128xf32>, vector<128x128xf32>, vector<128x128xf32> -> vector<128x384xf32>
    %46 = vector.shape_cast %45 : vector<128x384xf32> to vector<8x16x384xf32>
    %cst_11 = arith.constant dense<0xFF800000> : vector<8x384xf32>
    %47 = vector.multi_reduction <maximumf>, %46, %cst_11 [1] : vector<8x16x384xf32> to vector<8x384xf32>
    %48 = tpu.concatenate %45, %47 in 0 : vector<128x384xf32>, vector<8x384xf32> -> vector<136x384xf32>
    %49 = arith.truncf %48 : vector<136x384xf32> to vector<136x384xbf16>
    %c0_12 = arith.constant 0 : index
    %c0_13 = arith.constant 0 : index
    %50 = vector.load %arg3[%c0_12, %c0_13] : memref<384x128xbf16, #tpu.memory_space<vmem>>, vector<384x128xbf16>
    %cst_14 = arith.constant dense<0.000000e+00> : vector<136x128xf32>
    %51 = tpu.matmul %49, %50, %cst_14 {dimension_numbers = #tpu.dot_dimension_numbers<[1], [0], [0], [1], [0, 0, 1, 1], [], []>} : vector<136x384xbf16>, vector<384x128xbf16>, vector<136x128xf32> -> vector<136x128xf32>
    %52 = vector.extract_strided_slice %51 {offsets = [0, 0], sizes = [128, 128], strides = [1, 1]} : vector<136x128xf32> to vector<128x128xf32>
    %53 = vector.broadcast %8 : vector<1x128xf32> to vector<128x128xf32>
    %54 = arith.addf %52, %53 : vector<128x128xf32>
    %55 = arith.addf %54, %14 : vector<128x128xf32>
    %56 = vector.extract_strided_slice %51 {offsets = [128, 0], sizes = [8, 128], strides = [1, 1]} : vector<136x128xf32> to vector<8x128xf32>
    %57 = vector.broadcast %8 : vector<1x128xf32> to vector<8x128xf32>
    %58 = arith.addf %56, %57 : vector<8x128xf32>
    %59 = vector.shape_cast %14 : vector<128x128xf32> to vector<8x16x128xf32>
    %cst_15 = arith.constant dense<0.000000e+00> : vector<8x128xf32>
    %60 = vector.multi_reduction <add>, %59, %cst_15 [1] : vector<8x16x128xf32> to vector<8x128xf32>
    %cst_16 = arith.constant 1.600000e+01 : f32
    %61 = vector.broadcast %cst_16 : f32 to vector<8x128xf32>
    %62 = arith.divf %60, %61 : vector<8x128xf32>
    %63 = arith.addf %58, %62 : vector<8x128xf32>
    %64 = arith.mulf %55, %55 : vector<128x128xf32>
    %cst_17 = arith.constant dense<0.000000e+00> : vector<128xf32>
    %65 = vector.multi_reduction <add>, %64, %cst_17 [1] : vector<128x128xf32> to vector<128xf32>
    %66 = vector.shape_cast %65 : vector<128xf32> to vector<128x1xf32>
    %cst_18 = arith.constant 1.000000e-24 : f32
    %67 = vector.broadcast %cst_18 : f32 to vector<128x1xf32>
    %68 = arith.maximumf %66, %67 : vector<128x1xf32>
    %69 = math.rsqrt %68 : vector<128x1xf32>
    %70 = vector.broadcast %69 : vector<128x1xf32> to vector<128x128xf32>
    %71 = arith.mulf %55, %70 : vector<128x128xf32>
    %c0_19 = arith.constant 0 : index
    %c0_20 = arith.constant 0 : index
    %72 = vector.load %arg6[%c0_19, %c0_20] : memref<128x128xf32, #tpu.memory_space<vmem>>, vector<128x128xf32>
    tpu.vector_store %arg6[%c0_19, %c0_20], %71 {strides = array<i32>} : memref<128x128xf32, #tpu.memory_space<vmem>>, vector<128x128xf32>,
    %73 = arith.mulf %63, %63 : vector<8x128xf32>
    %cst_21 = arith.constant dense<0.000000e+00> : vector<8xf32>
    %74 = vector.multi_reduction <add>, %73, %cst_21 [1] : vector<8x128xf32> to vector<8xf32>
    %75 = vector.shape_cast %74 : vector<8xf32> to vector<8x1xf32>
    %cst_22 = arith.constant 1.000000e-24 : f32
    %76 = vector.broadcast %cst_22 : f32 to vector<8x1xf32>
    %77 = arith.maximumf %75, %76 : vector<8x1xf32>
    %78 = math.rsqrt %77 : vector<8x1xf32>
    %79 = vector.broadcast %78 : vector<8x1xf32> to vector<8x128xf32>
    %80 = arith.mulf %63, %79 : vector<8x128xf32>
    %c0_23 = arith.constant 0 : index
    %c0_24 = arith.constant 0 : index
    %81 = vector.load %arg7[%c0_23, %c0_24] : memref<8x128xf32, #tpu.memory_space<vmem>>, vector<8x128xf32>
    tpu.vector_store %arg7[%c0_23, %c0_24], %80 {strides = array<i32>} : memref<8x128xf32, #tpu.memory_space<vmem>>, vector<8x128xf32>,
    return
  }
  func.func @transform_0(%arg0: i32) -> (i32, i32) {
    %c0_i32 = arith.constant 0 : i32
    %c0_i32_0 = arith.constant 0 : i32
    return %arg0, %c0_i32 : i32, i32
  }
  func.func @transform_1(%arg0: i32) -> (i32, i32) {
    %c0_i32 = arith.constant 0 : i32
    %c0_i32_0 = arith.constant 0 : i32
    %c0_i32_1 = arith.constant 0 : i32
    return %c0_i32, %c0_i32_0 : i32, i32
  }
  func.func @transform_2(%arg0: i32) -> (i32, i32) {
    %c0_i32 = arith.constant 0 : i32
    %c0_i32_0 = arith.constant 0 : i32
    %c0_i32_1 = arith.constant 0 : i32
    return %c0_i32, %c0_i32_0 : i32, i32
  }
  func.func @transform_3(%arg0: i32) -> (i32, i32) {
    %c0_i32 = arith.constant 0 : i32
    %c0_i32_0 = arith.constant 0 : i32
    %c0_i32_1 = arith.constant 0 : i32
    return %c0_i32, %c0_i32_0 : i32, i32
  }
  func.func @transform_4(%arg0: i32) -> (i32, i32) {
    %c0_i32 = arith.constant 0 : i32
    %c0_i32_0 = arith.constant 0 : i32
    %c0_i32_1 = arith.constant 0 : i32
    return %c0_i32, %c0_i32_0 : i32, i32
  }
  func.func @transform_5(%arg0: i32) -> (i32, i32) {
    %c0_i32 = arith.constant 0 : i32
    %c0_i32_0 = arith.constant 0 : i32
    return %arg0, %c0_i32 : i32, i32
  }
  func.func @transform_6(%arg0: i32) -> (i32, i32) {
    %c0_i32 = arith.constant 0 : i32
    %c0_i32_0 = arith.constant 0 : i32
    return %arg0, %c0_i32 : i32, i32
  }
}

</mosaic_0001>

<bundles_post_ra>
// kernel: encoder_text_forward.1
= control target key start
LH: loop header
LB: loop body
LE: loop exit
PB: predicated region body
PF: predicated region fallthrough
CT: control target
= control target key end

     0   :  { %12 = vsyncpa [#allocation3], 0  ;;  %s4852_s0 = inlined_call_operand.vmem [shape: bf16[256,128], index: 0, kind: input, shape index: {}]   ;;  %s4853_s1 = inlined_call_operand.vmem [shape: bf16[128,896], index: 1, kind: input, shape index: {}]   ;;  %s4854_s2 = inlined_call_operand.vmem [shape: bf16[384,128], index: 2, kind: input, shape index: {}]   ;;  %s4855_s3 = inlined_call_operand.vmem [shape: f32[5,128], index: 3, kind: input, shape index: {}]   ;;  %s4856_s4 = inlined_call_operand.vmem [shape: f32[128,2], index: 4, kind: input, shape index: {}]   ;;  %s4857_s5 = inlined_call_operand.hbm [shape: f32[256,128], index: 5, kind: output, shape index: {0}]   ;;  %s4858_s6 = inlined_call_operand.hbm [shape: f32[16,128], index: 6, kind: output, shape index: {1}]  }
   0x1   :  { %14 = vsyncpa [#allocation3 + $0x1], 0 }
   0x2   :  { %15 = vsyncpa [#allocation5], 0 }
   0x3   :  { %17 = vsyncpa [#allocation5 + $0x1], 0  ;;  %s3271_s21 = smov 0   ;;  %s3273_s22 = smov 0  }
   0x4   :  { %s3275_s23 = smov 0   ;;  %s3277_s24 = smov 0  }
   0x5 LB: > { %s3292_s25 = sadd.s32 4294967295, %s3226_s24   ;;  %s2616_s26 = sadd.s32 4294967294, %s3226_s24   ;;  %s3226_s24 = sphi %s3277_s24, %s4994_s24   ;;  %s3222_s23 = sphi %s3275_s23, %s4993_s23   ;;  %s3218_s22 = sphi %s3273_s22, %s4992_s22   ;;  %s3214_s21 = sphi %s3271_s21, %s4991_s21  }
   0x6   : > { %s3296_s27 = sadd.s32 1, %s3226_s24   ;;  %s140_s28 = sadd.s32 1, %s3222_s23 }
   0x7   : > { %s137_s29 = ssub.s32 %s3226_s24, %s3296_s27  ;;  %p150_p0 = scmp.ne.s32.totalorder %s3222_s23, %s3218_s22 }
   0x8   : > { %p138_p1 = scmp.eq.s32.totalorder %s137_s29, 0  ;;  %p151_p2 = scmp.eq.s32.totalorder %s3292_s25, 1 }
   0x9   : > { %p156_p3 = scmp.ne.s32.totalorder %s3218_s22, %s3214_s21  ;;  %p157_p4 = scmp.eq.s32.totalorder %s2616_s26, 1 }
   0xa   : > { %s3307_s30 = scalar_select %p138_p1, %s3222_s23, %s140_s28  }
   0xb   : > { %p3309_p5 = por %p151_p2, %p150_p0  ;;  %p3313_p6 = por %p157_p4, %p156_p3 }
   0xc   : > { %p2619_p7 = scmp.ge.s32.totalorder %s3226_s24, 1  ;;  %p222_p8 = scmp.lt.s32.totalorder %s3226_s24, 3 }
   0xe   : > { %p223_p9 = pnand %p2619_p7, %p222_p8 }
  0x10   : > { %226 = sbr.rel (%p223_p9) target bundleno = 878 (0x36e), region = 40 }
  0x17   : > { %v2985_v0 = vld [vmem:[%s4853_s1 + $0x4] ss:$28 sps:$4 sm:$0xff]   ;;  %v2987_v1 = vld [vmem:[%s4853_s1 + $0xc] ss:$28 sps:$4 sm:$0xff]   ;;  %v3228_v2 = vmov 0   ;;  %s2622_s12 = sshll.u32 %s3292_s25, 4 }
  0x18   : > { %713 = vmatprep.mubr.bf16.mxu0 %v3228_v2  ;;  %826 = vmatprep.mubr.bf16.mxu1 %v3228_v2  ;;  %v2989_v3 = vld [vmem:[%s4853_s1] ss:$28 sps:$4 sm:$0xff]   ;;  %v2990_v4 = vld [vmem:[%s4853_s1 + $0x8] ss:$28 sps:$4 sm:$0xff]   ;;  %v2995_v7 = vld [vmem:[%s4853_s1 + $0x38] ss:$28 sps:$4 sm:$0xff]  }
  0x19   : > { %681 = vmatprep.subr.bf16.mxu0 %v2985_v0  ;;  %2974 = vset.pattern.permute.xlu1 %v3228_v2  ;;  %v2991_v5 = vld [vmem:[%s4853_s1 + $0x3c] ss:$28 sps:$4 sm:$0xff]   ;;  %v2993_v6 = vld [vmem:[%s4853_s1 + $0x44] ss:$28 sps:$4 sm:$0xff]   ;;  %v2997_v9 = vld [vmem:[%s4853_s1 + $0x74] ss:$28 sps:$4 sm:$0xff]  }
  0x1a   : > { %794 = vmatprep.subr.bf16.mxu1 %v2987_v1  ;;  %2973 = vset.pattern.permute.xlu0 %v3228_v2  ;;  %v2996_v8 = vld [vmem:[%s4853_s1 + $0x40] ss:$28 sps:$4 sm:$0xff]   ;;  %v3001_v11 = vld [vmem:[%s4853_s1 + $0x70] ss:$28 sps:$4 sm:$0xff]   ;;  %v3002_v12 = vld [vmem:[%s4853_s1 + $0x78] ss:$28 sps:$4 sm:$0xff]  }
  0x1b   : > { %682 = vmatpush1.bf16.msra.mxu0 %v2989_v3  ;;  %795 = vmatpush1.bf16.msra.mxu1 %v2990_v4  ;;  %v2999_v10 = vld [vmem:[%s4853_s1 + $0x7c] ss:$28 sps:$4 sm:$0xff]   ;;  %v3003_v13 = vld [vmem:[%s4853_s1 + $0xac] ss:$28 sps:$4 sm:$0xff]   ;;  %v3005_v14 = vld [vmem:[%s4853_s1 + $0xb4] ss:$28 sps:$4 sm:$0xff]  }
  0x1c   : > { %683 = vmatprep.subr.bf16.mxu0 %v2991_v5  ;;  %796 = vmatprep.subr.bf16.mxu1 %v2993_v6  ;;  %p258_p10 = scmp.lt.s32.totalorder %s2622_s12, 31  ;;  %v3007_v15 = vld [vmem:[%s4853_s1 + $0xa8] ss:$28 sps:$4 sm:$0xff]   ;;  %v3008_v16 = vld [vmem:[%s4853_s1 + $0xb0] ss:$28 sps:$4 sm:$0xff]   ;;  %v3527_v61 = vld [vmem:[%s4856_s4 + $0x18] sm:$0xff] }
  0x1d   : > { %v3009_v17 = vld [vmem:[%s4853_s1 + $0xe4] ss:$28 sps:$4 sm:$0xff]   ;;  %v3011_v18 = vld [vmem:[%s4853_s1 + $0xec] ss:$28 sps:$4 sm:$0xff]   ;;  %v3015_v21 = vld [vmem:[%s4853_s1 + $0x11c] ss:$28 sps:$4 sm:$0xff]  }
  0x1e   : > { %s4996_s12 = smov (!%p258_p10, %s2622_s12), 31  ;;  %v3013_v19 = vld [vmem:[%s4853_s1 + $0xe0] ss:$28 sps:$4 sm:$0xff]   ;;  %v3014_v20 = vld [vmem:[%s4853_s1 + $0xe8] ss:$28 sps:$4 sm:$0xff]   ;;  %v3500_v53 = vld [vmem:[%s4856_s4 + $0x10] sm:$0xff] }
  0x1f   : > { %684 = vmatpush1.bf16.msra.mxu0 %v2995_v7  ;;  %797 = vmatpush1.bf16.msra.mxu1 %v2996_v8  ;;  %v3017_v22 = vld [vmem:[%s4853_s1 + $0x124] ss:$28 sps:$4 sm:$0xff]   ;;  %s2623_s10 = sshll.u32 %s4996_s12, 2  ;;  %v3019_v23 = vld [vmem:[%s4853_s1 + $0x118] ss:$28 sps:$4 sm:$0xff]   ;;  %v1119_v62 = vld [vmem:[%s4856_s4 + $0x8] sm:$0xff] }
  0x20   : > { %685 = vmatprep.subr.bf16.mxu0 %v2997_v9  ;;  %798 = vmatprep.subr.bf16.mxu1 %v2999_v10  ;;  %v3020_v24 = vld [vmem:[%s4853_s1 + $0x120] ss:$28 sps:$4 sm:$0xff]   ;;  %v3021_v25 = vld [vmem:[%s4853_s1 + $0x154] ss:$28 sps:$4 sm:$0xff]   ;;  %s3402_s20 = scalar_lea.vmem %s4852_s0, %s2623_s10  ;;  %v3027_v29 = vld [vmem:[%s4853_s1 + $0x18c] ss:$28 sps:$4 sm:$0xff]  }
  0x21   : > { %v3023_v26 = vld [vmem:[%s4853_s1 + $0x15c] ss:$28 sps:$4 sm:$0xff]   ;;  %v3025_v27 = vld [vmem:[%s4853_s1 + $0x150] ss:$28 sps:$4 sm:$0xff]   ;;  %v3031_v31 = vld [vmem:[%s4853_s1 + $0x188] ss:$28 sps:$4 sm:$0xff]   ;;  %1237 = vperm.xlu1 %2974, %v3500_v53  }
  0x22   : > { %v3026_v28 = vld [vmem:[%s4853_s1 + $0x158] ss:$28 sps:$4 sm:$0xff]   ;;  %v3032_v32 = vld [vmem:[%s4853_s1 + $0x190] ss:$28 sps:$4 sm:$0xff]   ;;  %v3429_v34 = vld [vmem:[%s3402_s20] sm:$0xff]   ;;  %v3229_v8 = vmov 1  }
  0x23   : > { %686 = vmatpush1.bf16.msra.mxu0 %v3001_v11  ;;  %799 = vmatpush1.bf16.msra.mxu1 %v3002_v12  ;;  %v3029_v30 = vld [vmem:[%s4853_s1 + $0x194] ss:$28 sps:$4 sm:$0xff]   ;;  %v3040_v36 = vld [vmem:[%s4853_s1 + $0x4c] ss:$28 sps:$4 sm:$0xff]   ;;  %v3044_v40 = vld [vmem:[%s4853_s1 + $0x84] ss:$28 sps:$4 sm:$0xff]  }
  0x24   : > { %687 = vmatprep.subr.bf16.mxu0 %v3003_v13  ;;  %800 = vmatprep.subr.bf16.mxu1 %v3005_v14  ;;  %v3036_v33 = vld [vmem:[%s4853_s1 + $0x14] ss:$28 sps:$4 sm:$0xff]   ;;  %v3038_v38 = vld [vmem:[%s4853_s1 + $0x48] ss:$28 sps:$4 sm:$0xff]   ;;  %v3042_v42 = vld [vmem:[%s4853_s1 + $0x80] ss:$28 sps:$4 sm:$0xff]  }
  0x25   : > { %v3034_v35 = vld [vmem:[%s4853_s1 + $0x10] ss:$28 sps:$4 sm:$0xff]   ;;  %v3053_v37 = vld [vmem:[%s4853_s1 + $0x18] ss:$28 sps:$4 sm:$0xff]   ;;  %v3059_v44 = vld [vmem:[%s4853_s1 + $0x88] ss:$28 sps:$4 sm:$0xff]   ;;  %1242 = vperm.xlu1 %2974, %v3527_v61  }
  0x26   : > { %v3054_v39 = vld [vmem:[%s4853_s1 + $0x50] ss:$28 sps:$4 sm:$0xff]   ;;  %v3048_v43 = vld [vmem:[%s4853_s1 + $0xbc] ss:$28 sps:$4 sm:$0xff]   ;;  %v3056_v52 = vld [vmem:[%s4853_s1 + $0x128] ss:$28 sps:$4 sm:$0xff]  }
  0x27   : > { %688 = vmatpush1.bf16.msra.mxu0 %v3007_v15  ;;  %801 = vmatpush1.bf16.msra.mxu1 %v3008_v16  ;;  %v3454_v41 = vld [vmem:[%s3402_s20 + $0x8] sm:$0xff]   ;;  %v3046_v45 = vld [vmem:[%s4853_s1 + $0xb8] ss:$28 sps:$4 sm:$0xff]   ;;  %v3060_v47 = vld [vmem:[%s4853_s1 + $0xc0] ss:$28 sps:$4 sm:$0xff]   ;;  %vm1794_vm1 = vcmask 1041409  }
  0x28   : > { %689 = vmatprep.subr.bf16.mxu0 %v3009_v17  ;;  %802 = vmatprep.subr.bf16.mxu1 %v3011_v18  ;;  %v3052_v46 = vld [vmem:[%s4853_s1 + $0xf4] ss:$28 sps:$4 sm:$0xff]   ;;  %v3058_v50 = vld [vmem:[%s4853_s1 + $0x12c] ss:$28 sps:$4 sm:$0xff]   ;;  %v1118_v54 = vld [vmem:[%s4856_s4] sm:$0xff]  ;;  %vm1796_vm2 = vcmask 1042434  }
  0x29   : > { %v3479_v48 = vld [vmem:[%s3402_s20 + $0x10] sm:$0xff]   ;;  %v3506_v55 = vld [vmem:[%s3402_s20 + $0x18] sm:$0xff]   ;;  %v3064_v56 = vld [vmem:[%s4853_s1 + $0x164] ss:$28 sps:$4 sm:$0xff]   ;;  %1227 = vperm.xlu0 %2973, %v1118_v54   ;;  %vm1798_vm4 = vcmask 1043459   ;;  %vm1800_vm5 = vcmask 1044484  }
  0x2a   : > { %v3050_v49 = vld [vmem:[%s4853_s1 + $0xf0] ss:$28 sps:$4 sm:$0xff]   ;;  %v3065_v51 = vld [vmem:[%s4853_s1 + $0xf8] ss:$28 sps:$4 sm:$0xff]   ;;  %v3062_v58 = vld [vmem:[%s4853_s1 + $0x160] ss:$28 sps:$4 sm:$0xff]  }
  0x2b   : > { %690 = vmatpush1.bf16.msra.mxu0 %v3013_v19  ;;  %803 = vmatpush1.bf16.msra.mxu1 %v3014_v20  ;;  %v3066_v57 = vld [vmem:[%s4853_s1 + $0x130] ss:$28 sps:$4 sm:$0xff]   ;;  %v3070_v59 = vld [vmem:[%s4853_s1 + $0x19c] ss:$28 sps:$4 sm:$0xff]   ;;  %v3071_v60 = vld [vmem:[%s4853_s1 + $0x168] ss:$28 sps:$4 sm:$0xff]  }
  0x2c   : > { %691 = vmatprep.subr.bf16.mxu0 %v3015_v21  ;;  %804 = vmatprep.subr.bf16.mxu1 %v3017_v22  ;;  %v3068_v63 = vld [vmem:[%s4853_s1 + $0x198] ss:$28 sps:$4 sm:$0xff]   ;;  %v3072_v0 = vld [vmem:[%s4853_s1 + $0x1a0] ss:$28 sps:$4 sm:$0xff]   ;;  %v3549_v3 = vld [vmem:[%s4856_s4 + $0x28] sm:$0xff]  ;;  %vm1802_vm6 = vcmask 1045509  }
  0x2d   : > { %v3543_v1 = vld [vmem:[%s3402_s20 + $0x20] sm:$0xff]   ;;  %1232 = vperm.xlu0 %2973, %v1119_v62   ;;  %1252 = vperm.xlu1 %2974, %v3549_v3   ;;  %v3565_v6 = vld [vmem:[%s4856_s4 + $0x38] sm:$0xff]  ;;  %v3568_v7 = vld [vmem:[%s3402_s20 + $0x28] sm:$0xff]   ;;  %vm1804_vm7 = vcmask 1046534   ;;  %vm1806_vm8 = vcmask 1047559   ;;  %vm3231_vm9 = vmmov 0  }
  0x2e   : > { %v3073_v4 = vld [vmem:[%s4854_s2 + $0x40] sm:$0xff]   ;;  %v3578_v9 = vld [vmem:[%s3402_s20 + $0x30] sm:$0xff]   ;;  %v1127_v12 = vld [vmem:[%s4856_s4 + $0x48] sm:$0xff]  ;;  %s4733_s28 = sand.u32 1, %s3218_s22   ;;  %s2716_s11 = sshll.u32 %s3292_s25, 7 }
  0x2f   : > { %692 = vmatpush1.bf16.msra.mxu0 %v3019_v23  ;;  %805 = vmatpush1.bf16.msra.mxu1 %v3020_v24  ;;  %v1122_v5 = vld [vmem:[%s4856_s4 + $0x20] sm:$0xff]  ;;  %v1124_v10 = vld [vmem:[%s4856_s4 + $0x30] sm:$0xff]  ;;  %v3599_v13 = vld [vmem:[%s3402_s20 + $0x38] sm:$0xff]   ;;  %s2620_s29 = sshll.u32 %s4733_s28, 7  ;;  %s2621_s9 = sshll.u32 %s4733_s28, 3 }
  0x30   : > { %693 = vmatprep.subr.bf16.mxu0 %v3021_v25  ;;  %806 = vmatprep.subr.bf16.mxu1 %v3023_v26  ;;  %v3588_v11 = vld [vmem:[%s4856_s4 + $0x40] sm:$0xff]  ;;  %v3604_v14 = vld [vmem:[%s4856_s4 + $0x50] sm:$0xff]  ;;  %v1131_v15 = vld [vmem:[%s4856_s4 + $0x68] sm:$0xff]  ;;  %s4737_s20 = scalar_lea.vmem [#allocation2], %s2620_s29  ;;  %s256_s10 = scalar_lea.vmem [#allocation4], %s2621_s9 }
  0x31   : > { %1247 = vperm.xlu0 %2973, %v1122_v5   ;;  %1262 = vperm.xlu1 %2974, %v3565_v6   ;;  %v1129_v16 = vld [vmem:[%s4856_s4 + $0x58] sm:$0xff]  ;;  %v3074_v17 = vld [vmem:[%s4854_s2] sm:$0xff]   ;;  %v3075_v18 = vld [vmem:[%s4854_s2 + $0x48] sm:$0xff]   ;;  %s2525_s13 = sshll.u32 %s256_s10, 4  ;;  %s2719_s14 = sshll.u32 %s3292_s25, 11  ;;  %s4778_s13 = int_to_ptr.vmem [resolvable:$true] %s2525_s13 }
  0x32   : > { %v3076_v19 = vld [vmem:[%s4854_s2 + $0x8] sm:$0xff]   ;;  %v1130_v20 = vld [vmem:[%s4856_s4 + $0x60] sm:$0xff]  ;;  %v1132_v21 = vld [vmem:[%s4856_s4 + $0x70] sm:$0xff]  ;;  %s2509_s15 = sshll.u32 %s4737_s20, 4  ;;  %s4776_s18 = scalar_lea.hbm %s4858_s6, %s2716_s11  ;;  %s4785_s15 = int_to_ptr.vmem [resolvable:$true] %s2509_s15 }
  0x33   : > { %694 = vmatpush1.bf16.msra.mxu0 %v3025_v27  ;;  %807 = vmatpush1.bf16.msra.mxu1 %v3026_v28  ;;  %v3077_v22 = vld [vmem:[%s4854_s2 + $0x50] sm:$0xff]   ;;  %v1133_v24 = vld [vmem:[%s4856_s4 + $0x78] sm:$0xff]  ;;  %v3081_v27 = vld [vmem:[%s4854_s2 + $0x60] sm:$0xff]   ;;  %s4783_s25 = scalar_lea.hbm %s4857_s5, %s2719_s14  ;;  %s2496_s26 = scalar_lea.sflag [#allocation5], %s4733_s28 }
  0x34   : > { %695 = vmatprep.subr.bf16.mxu0 %v3027_v29  ;;  %808 = vmatprep.subr.bf16.mxu1 %v3029_v30  ;;  %v3078_v23 = vld [vmem:[%s4854_s2 + $0x10] sm:$0xff]   ;;  %v3079_v25 = vld [vmem:[%s4854_s2 + $0x58] sm:$0xff]   ;;  %v3082_v28 = vld [vmem:[%s4854_s2 + $0x20] sm:$0xff]   ;;  %s3132_s29 = scalar_lea.vmem %s4778_s13, 128  ;;  %s3232_s9 = smov [#allocation4]  }
  0x35   : > { %2975 = vset.pattern.permute.xlu0 %v3229_v8  ;;  %2977 = vset.pattern.permute.xlu1 %v3229_v8  ;;  %v3080_v26 = vld [vmem:[%s4854_s2 + $0x18] sm:$0xff]   ;;  %v3083_v29 = vld [vmem:[%s4854_s2 + $0x68] sm:$0xff]   ;;  %p3133_p11 = scmp.ne.s32.totalorder %s4778_s13, %s3132_s29  ;;  %s3136_s11 = sshll.u32 %s3232_s9, 4  ;;  %s3137_s11 = int_to_ptr.vmem [resolvable:$false] %s3136_s11 }
  0x36   : > { %1407 = vperm.xlu0 %2975, %v1118_v54   ;;  %1411 = vperm.xlu1 %2977, %v1119_v62   ;;  %v3084_v30 = vld [vmem:[%s4854_s2 + $0x28] sm:$0xff]   ;;  %s3138_s16 = scalar_lea.vmem %s3137_s11, 256  ;;  %p3139_p0 = scmp.lt.s32.totalorder %s4778_s13, %s3137_s11 }
  0x37   : > { %696 = vmatpush1.bf16.msra.mxu0 %v3031_v31  ;;  %809 = vmatpush1.bf16.msra.mxu1 %v3032_v32  ;;  %v3085_v31 = vld [vmem:[%s4854_s2 + $0x70] sm:$0xff]   ;;  %p3134_p12 = pnand %p3133_p11, %p3309_p5  ;;  %p3140_p1 = scmp.lt.s32.totalorder %s3138_s16, %s3132_s29 }
  0x38   : > { %907 = vmatprep.subr.bf16.mxu0 %v3036_v33  ;;  %2823 = vmatprep.subr.bf16.mxu1 %v3053_v37  ;;  %v3086_v32 = vld [vmem:[%s4854_s2 + $0x30] sm:$0xff]   ;;  %v3087_v33 = vld [vmem:[%s4854_s2 + $0x78] sm:$0xff]  }
  0x39   : > { %p3135_p13 = pneg %p3134_p12  ;;  %p3141_p2 = por %p3140_p1, %p3139_p0 }
  0x3a   : > { %714 = vmatmul.mubr.bf16.vlgmr.msra.gmra.mrb[0].mxu0 %v3429_v34  ;;  %827 = vmatmul.mubr.bf16.vlgmr.msra.gmra.mrb[0].mxu1 %v3429_v34 }
  0x3b   : > { %908 = vmatpush1.bf16.msra.mxu0 %v3034_v35  ;;  %723 = vmatprep.mubr.bf16.mxu0 %v3228_v2  ;;  %v4862_v35 = vmov 0.0   ;;  %p3142_p3 = pnand %p3141_p2, %p3135_p13 }
  0x3c   : > { %836 = vmatprep.mubr.bf16.mxu1 %v3228_v2  ;;  %909 = vmatprep.subr.bf16.mxu0 %v3040_v36  ;;  %v1134_v36 = vlaneseq }
  0x3d   : > { %2824 = vmatpush3.bf16.msra.mxu1 %v3053_v37  ;;  %2976 = vset.pattern.permute.xlu0 %v3228_v2 }
  0x3e   : > { %2825 = vmatprep.subr.bf16.mxu1 %v3054_v39  ;;  %2978 = vset.pattern.permute.xlu1 %v3228_v2 }
  0x3f   : > { %910 = vmatpush1.bf16.msra.mxu0 %v3038_v38  ;;  %1257 = vperm.xlu0 %2976, %v1124_v10   ;;  %v3709_v38 = vshrl.u32 %v1134_v36, 7 }
  0x40   : > { %911 = vmatprep.subr.bf16.mxu0 %v3044_v40  ;;  %1267 = vperm.xlu1 %2978, %v3588_v11  }
  0x41   : > { %2826 = vmatpush3.bf16.msra.mxu1 %v3054_v39  ;;  %v3714_v39 = vld [vmem:[%s4854_s2 + $0x80] sm:$0xff]   ;;  %vm1208_vm0 = vcmp.lt.s32.totalorder %v3709_v38, 7  ;;  %vm1389_vm3 = vcmp.lt.s32.totalorder %v3709_v38, 1 }
  0x42   : > { %724 = vmatmul.mubr.bf16.gmra.mrb[4].mxu0 %v3454_v41  ;;  %837 = vmatmul.mubr.bf16.gmra.mrb[4].mxu1 %v3454_v41 }
  0x43   : > { %733 = vmatprep.mubr.bf16.mxu0 %v3228_v2  ;;  %846 = vmatprep.mubr.bf16.mxu1 %v3228_v2 }
  0x44   : > { %912 = vmatpush1.bf16.msra.mxu0 %v3042_v42  ;;  %2827 = vmatprep.subr.bf16.mxu1 %v3059_v44  ;;  %v3729_v42 = vld [vmem:[%s4855_s3] sm:$0x1f] }
  0x45   : > { %913 = vmatprep.subr.bf16.mxu0 %v3048_v43  ;;  %2828 = vmatpush3.bf16.msra.mxu1 %v3059_v44  ;;  %v1136_v43 = vsub.s32 0, %v3709_v38  ;;  %v3736_v44 = vld [vmem:[%s4854_s2 + $0x90] sm:$0xff]  }
  0x46   : > { %2829 = vmatprep.subr.bf16.mxu1 %v3060_v47  ;;  %1272 = vperm.xlu0 %2976, %v1127_v12  }
  0x47   : > { %2979 = vset.pattern.permute.xlu1 %v3229_v8 }
  0x48   : > { %914 = vmatpush1.bf16.msra.mxu0 %v3046_v45  ;;  %1415 = vperm.xlu1 %2979, %v3500_v53  }
  0x49   : > { %915 = vmatprep.subr.bf16.mxu0 %v3052_v46  ;;  %2830 = vmatpush3.bf16.msra.mxu1 %v3060_v47  ;;  %v3743_v46 = vrot.slane %v3729_v42, %v1136_v43 }
  0x4a   : > { %734 = vmatmul.mubr.bf16.gmra.mrb[8].mxu0 %v3479_v48  ;;  %847 = vmatmul.mubr.bf16.gmra.mrb[8].mxu1 %v3479_v48 }
  0x4b   : > { %743 = vmatprep.mubr.bf16.mxu0 %v3228_v2  ;;  %856 = vmatprep.mubr.bf16.mxu1 %v3228_v2 }
  0x4c   : > { %916 = vmatpush1.bf16.msra.mxu0 %v3050_v49  ;;  %2831 = vmatprep.subr.bf16.mxu1 %v3065_v51 }
  0x4d   : > { %917 = vmatprep.subr.bf16.mxu0 %v3058_v50  ;;  %2832 = vmatpush3.bf16.msra.mxu1 %v3065_v51 }
  0x4e   : > { %2833 = vmatprep.subr.bf16.mxu1 %v3066_v57  ;;  %1277 = vperm.xlu0 %2976, %v3604_v14  }
  0x4f   : > { %1419 = vperm.xlu1 %2979, %v3527_v61  }
  0x50   : > { %918 = vmatpush1.bf16.msra.mxu0 %v3056_v52 }
  0x51   : > { %919 = vmatprep.subr.bf16.mxu0 %v3064_v56  ;;  %2834 = vmatpush3.bf16.msra.mxu1 %v3066_v57 }
  0x52   : > { %744 = vmatmul.mubr.bf16.gmra.mrb[12].mxu0 %v3506_v55  ;;  %857 = vmatmul.mubr.bf16.gmra.mrb[12].mxu1 %v3506_v55 }
  0x53   : > { %753 = vmatprep.mubr.bf16.mxu0 %v3228_v2  ;;  %866 = vmatprep.mubr.bf16.mxu1 %v3228_v2 }
  0x54   : > { %920 = vmatpush1.bf16.msra.mxu0 %v3062_v58  ;;  %2835 = vmatprep.subr.bf16.mxu1 %v3071_v60 }
  0x55   : > { %921 = vmatprep.subr.bf16.mxu0 %v3070_v59  ;;  %2836 = vmatpush3.bf16.msra.mxu1 %v3071_v60 }
  0x56   : > { %2837 = vmatprep.subr.bf16.mxu1 %v3072_v0  ;;  %1292 = vperm.xlu0 %2976, %v1131_v15  }
  0x57   : > { %2980 = vset.pattern.permute.xlu1 %v3228_v2 }
  0x58   : > { %922 = vmatpush1.bf16.msra.mxu0 %v3068_v63  ;;  %1282 = vperm.xlu1 %2980, %v1129_v16   ;;  %v1339_v63 = vsub.s32 2, %v3709_v38 }
  0x59   : > { %2838 = vmatpush3.bf16.msra.mxu1 %v3072_v0  ;;  %2855 = vmatprep.subr.bf16.mxu0 %v4862_v35 }
  0x5a   : > { %754 = vmatmul.mubr.bf16.gmra.mrb[16].mxu0 %v3543_v1  ;;  %867 = vmatmul.mubr.bf16.gmra.mrb[16].mxu1 %v3543_v1 }
  0x5b   : > { %763 = vmatprep.mubr.bf16.mxu0 %v3228_v2  ;;  %876 = vmatprep.mubr.bf16.mxu1 %v3228_v2 }
  0x5c   : > { %2736 = vmatprep.subr.bf16.mxu1 %v3073_v4  ;;  %2983 = vset.pattern.permute.xlu0 %v3229_v8 }
  0x5d   : > { %1423 = vperm.xlu0 %2983, %v1122_v5   ;;  %2981 = vset.pattern.permute.xlu1 %v3229_v8 }
  0x5e   : > { %1427 = vperm.xlu1 %2981, %v3549_v3  }
  0x61   : > { %1431 = vperm.xlu0 %2983, %v1124_v10  }
  0x62   : > { %764 = vmatmul.mubr.bf16.gmra.mrb[20].mxu0 %v3568_v7  ;;  %877 = vmatmul.mubr.bf16.gmra.mrb[20].mxu1 %v3568_v7 }
  0x63   : > { %773 = vmatprep.mubr.bf16.mxu0 %v3228_v2  ;;  %886 = vmatprep.mubr.bf16.mxu1 %v3228_v2 }
  0x64   : > { %2982 = vset.pattern.permute.xlu1 %v3228_v2 }
  0x65   : > { %1443 = vperm.xlu0 %2983, %v1127_v12   ;;  %1287 = vperm.xlu1 %2982, %v1130_v20   ;;  %v3783_v12 = vrot.slane %v3729_v42, %v1339_v63 }
  0x69   : > { %1451 = vperm.xlu0 %2983, %v1129_v16   ;;  %1297 = vperm.xlu1 %2982, %v1132_v21  }
  0x6a   : > { %774 = vmatmul.mubr.bf16.gmra.mrb[24].mxu0 %v3578_v9  ;;  %887 = vmatmul.mubr.bf16.gmra.mrb[24].mxu1 %v3578_v9 }
  0x6b   : > { %783 = vmatprep.mubr.bf16.mxu0 %v3228_v2  ;;  %896 = vmatprep.mubr.bf16.mxu1 %v3228_v2 }
  0x6d   : > { %1459 = vperm.xlu0 %2983, %v1131_v15   ;;  %1302 = vperm.xlu1 %2982, %v1133_v24  }
  0x71   : > { %1467 = vperm.xlu0 %2983, %v1133_v24   ;;  %2984 = vset.pattern.permute.xlu1 %v3229_v8 }
  0x72   : > { %784 = vmatmul.mubr.bf16.gmra.mrb[28].mxu0 %v3599_v13  ;;  %897 = vmatmul.mubr.bf16.gmra.mrb[28].mxu1 %v3599_v13 }
  0x73   : > { %939 = vmatprep.mubr.bf16.mxu0 %v3228_v2  ;;  %2839 = vmatprep.mubr.bf16.mxu1 %v3429_v34 }
  0x74   : > { %1435 = vperm.xlu1 %2984, %v3565_v6  }
  0x78   : > { %1439 = vperm.xlu1 %2984, %v3588_v11  }
  0x7a   : > { %940 = vmatmul.mubr.bf16.vlgmr.msra.gmra.mrb[32].mxu0 %v3429_v34  ;;  %2840 = vmatmul.mubr.bf16.vlgmr.msra.gmra.mrb[32].mxu1 %v3454_v41  ;;  %v3088_v34 = vld [vmem:[%s4854_s2 + $0x38] sm:$0xff]  }
  0x7b   : > { %949 = vmatprep.mubr.bf16.mxu0 %v3228_v2  ;;  %2843 = vmatprep.mubr.bf16.mxu1 %v3479_v48 }
  0x7c   : > { %2737 = vmatpush3.bf16.msra.mxu1 %v3074_v17  ;;  %1447 = vperm.xlu1 %2984, %v3604_v14  }
  0x7d   : > { %2738 = vmatprep.subr.bf16.mxu1 %v3075_v18  ;;  %2856 = vmatpush3.bf16.msra.mxu0 %v3714_v39 }
  0x7e   : > { %2857 = vmatprep.subr.bf16.mxu0 %v4862_v35 }
  0x80   : > { %2739 = vmatpush3.bf16.msra.mxu1 %v3076_v19  ;;  %1455 = vperm.xlu1 %2984, %v1130_v20  }
  0x81   : > { %2740 = vmatprep.subr.bf16.mxu1 %v3077_v22 }
  0x82   : > { %950 = vmatmul.mubr.bf16.gmra.mrb[36].mxu0 %v3454_v41  ;;  %2844 = vmatmul.mubr.bf16.gmra.mrb[36].mxu1 %v3506_v55  ;;  %v1156_v41 = vsub.s32 1, %v3709_v38 }
  0x83   : > { %959 = vmatprep.mubr.bf16.mxu0 %v3228_v2  ;;  %2847 = vmatprep.mubr.bf16.mxu1 %v3543_v1 }
  0x84   : > { %2741 = vmatpush3.bf16.msra.mxu1 %v3078_v23  ;;  %1463 = vperm.xlu1 %2984, %v1132_v21   ;;  %v3740_v45 = vrot.slane %v3729_v42, %v1156_v41 }
  0x85   : > { %2742 = vmatprep.subr.bf16.mxu1 %v3079_v25 }
  0x88   : > { %2743 = vmatpush3.bf16.msra.mxu1 %v3080_v26 }
  0x89   : > { %2744 = vmatprep.subr.bf16.mxu1 %v3081_v27 }
  0x8a   : > { %960 = vmatmul.mubr.bf16.gmra.mrb[40].mxu0 %v3479_v48  ;;  %2848 = vmatmul.mubr.bf16.gmra.mrb[40].mxu1 %v3568_v7 }
  0x8b   : > { %969 = vmatprep.mubr.bf16.mxu0 %v3228_v2  ;;  %2851 = vmatprep.mubr.bf16.mxu1 %v3578_v9 }
  0x8c   : > { %2745 = vmatpush3.bf16.msra.mxu1 %v3082_v28 }
  0x8d   : > { %2746 = vmatprep.subr.bf16.mxu1 %v3083_v29 }
  0x90   : > { %2747 = vmatpush3.bf16.msra.mxu1 %v3084_v30 }
  0x91   : > { %2748 = vmatprep.subr.bf16.mxu1 %v3085_v31 }
  0x92   : > { %970 = vmatmul.mubr.bf16.gmra.mrb[44].mxu0 %v3506_v55  ;;  %2852 = vmatmul.mubr.bf16.gmra.mrb[44].mxu1 %v3599_v13 }
  0x93   : > { %979 = vmatprep.mubr.bf16.mxu0 %v3228_v2 }
  0x94   : > { %2749 = vmatpush3.bf16.msra.mxu1 %v3086_v32 }
  0x95   : > { %2750 = vmatprep.subr.bf16.mxu1 %v3087_v33 }
  0x98   : > { %2751 = vmatpush3.bf16.msra.mxu1 %v3088_v34 }
  0x99   : > { %2907 = vmatprep.subr.bf16.mxu1 %v4862_v35 }
  0x9a   : > { %980 = vmatmul.mubr.bf16.gmra.mrb[48].mxu0 %v3543_v1 }
  0x9b   : > { %989 = vmatprep.mubr.bf16.mxu0 %v3228_v2 }
  0xa0   : > { %v3707_v37 = vpop.permute.xlu1 %1237 }
  0xa2   : > { %990 = vmatmul.mubr.bf16.gmra.mrb[52].mxu0 %v3568_v7 }
  0xa3   : > { %999 = vmatprep.mubr.bf16.mxu0 %v3228_v2 }
  0xa4   : > { %v3722_v40 = vpop.permute.xlu1 %1242 }
  0xa8   : > { %v3745_v47 = vpop.permute.xlu0 %1227 }
  0xa9   : > { %4899 = vst [vmem:[#allocation8_spill] sm:$0xff] %v3745_v47 }
  0xaa   : > { %1000 = vmatmul.mubr.bf16.gmra.mrb[56].mxu0 %v3578_v9  ;;  %v3778_v9 = vld [vmem:[%s4854_s2 + $0x98] sm:$0xff]  }
  0xab   : > { %1009 = vmatprep.mubr.bf16.mxu0 %v3228_v2  ;;  %v3720_v2 = vld [vmem:[%s4854_s2 + $0x88] sm:$0xff]  }
  0xac   : > { %2858 = vmatpush3.bf16.msra.mxu0 %v3720_v2  ;;  %v3747_v48 = vpop.permute.xlu1 %1252  ;;  %v3771_v7 = vpop.permute.xlu0 %1232 }
  0xad   : > { %2859 = vmatprep.subr.bf16.mxu0 %v4862_v35  ;;  %4900 = vst [vmem:[#allocation9_spill] sm:$0xff] %v3747_v48 }
  0xb0   : > { %2860 = vmatpush3.bf16.msra.mxu0 %v3736_v44  ;;  %v3773_v8 = vpop.permute.xlu1 %1262 }
  0xb1   : > { %2861 = vmatprep.subr.bf16.mxu0 %v4862_v35  ;;  %4903 = vst [vmem:[#allocation12_spill] sm:$0xff] %v3773_v8 }
  0xb2   : > { %1010 = vmatmul.mubr.bf16.gmra.mrb[60].mxu0 %v3599_v13 }
  0xb4   : > { %2862 = vmatpush3.bf16.msra.mxu0 %v3778_v9 }
  0xb5   : > { %2863 = vmatprep.subr.bf16.mxu0 %v4862_v35 }
 0x10d   : > { %v715_v49 = vpop.f32.mrb[0].mxu0  ;;  %v828_v50 = vpop.f32.mrb[0].mxu1 }
 0x10e   : > { %v717_v51 = vpop.f32.mrb[1].mxu0  ;;  %v3750_v52 = vpop.f32.mrb[1].mxu1  ;;  %v3756_v57 = vadd.f32 %v3743_v46, %v715_v49 }
 0x10f   : > { %v1158_v53 = vadd.f32 %v3740_v45, %v717_v51  ;;  %v719_v54 = vpop.f32.mrb[2].mxu0  ;;  %v4859_v55 = vrot.slane %v3750_v52, 1  ;;  %v832_v56 = vpop.f32.mrb[2].mxu1 }
 0x110   : > { %4901 = vst [vmem:[#allocation10_spill] sm:$0xff] %v3756_v57  ;;  %v3759_v58 = vadd.f32 %v3743_v46, %v719_v54  ;;  %v721_v59 = vpop.f32.mrb[3].mxu0  ;;  %v834_v60 = vpop.f32.mrb[3].mxu1 }
 0x111   : > { %v1159_v61 = vadd.f32 %v3740_v45, %v721_v59  ;;  %v1191_v62 = vrot.slane %v834_v60, 1  ;;  %v1174_v1 = vmax.f32 %v1158_v53, 0.0  ;;  %v3807_v60 = vpop.permute.xlu1 %1411 }
 0x112   : > { %4902 = vst [vmem:[#allocation11_spill] sm:$0xff] %v3759_v58  ;;  %v2289_v0 = vadd.f32 %v3759_v58, %v3756_v57 }
 0x113   : > { %v1175_v3 = vmax.f32 %v1159_v61, 0.0  ;;  %v1223_v4 = vsel %vm1208_vm0, %v4859_v55, %v1191_v62  ;;  %v3812_v61 = vld [vmem:[%s4854_s2 + $0xa0] sm:$0xff]  }
 0x114   : > { %v2290_v5 = vrot.slane %v2289_v0, 4  ;;  %v1305_v6 = vmul.f32 %v3745_v47, %v1223_v4  ;;  %2864 = vmatpush3.bf16.msra.mxu0 %v3812_v61 }
 0x115   : > { %v1602_v10 = vmax.f32 %v1174_v1, %v1175_v3  ;;  %v3780_v11 = vpack.c.bf16 %v1175_v3, %v1174_v1  ;;  %v725_v13 = vpop.f32.mrb[4].mxu0  ;;  %v838_v14 = vpop.f32.mrb[4].mxu1  ;;  %2865 = vmatprep.subr.bf16.mxu0 %v4862_v35 }
 0x116   : > { %v2291_v15 = vadd.f32 %v2290_v5, %v2289_v0  ;;  %v1321_v16 = vadd.f32 %v1305_v6, %v828_v50  ;;  %v727_v17 = vpop.f32.mrb[5].mxu0  ;;  %v840_v18 = vpop.f32.mrb[5].mxu1  ;;  %v3791_v25 = vadd.f32 %v3743_v46, %v725_v13 }
 0x117   : > { %v1603_v19 = vrot.slane %v1602_v10, 4  ;;  %v1160_v20 = vadd.f32 %v3740_v45, %v727_v17  ;;  %v1192_v21 = vrot.slane %v840_v18, 1  ;;  %v729_v22 = vpop.f32.mrb[6].mxu0  ;;  %v3787_v23 = vpop.f32.mrb[6].mxu1 }
 0x118   : > { %v2292_v24 = vrot.slane %v2291_v15, 2  ;;  %4904 = vst [vmem:[#allocation13_spill] sm:$0xff] %v3791_v25  ;;  %v3794_v26 = vadd.f32 %v3743_v46, %v729_v22  ;;  %v731_v27 = vpop.f32.mrb[7].mxu0  ;;  %v844_v28 = vpop.f32.mrb[7].mxu1  ;;  %v3797_v30 = vadd.f32 %v3783_v12, %v1321_v16 }
 0x119   : > { %v1604_v29 = vmax.f32 %v1602_v10, %v1603_v19  ;;  %v1161_v31 = vadd.f32 %v3740_v45, %v731_v27  ;;  %v1222_v32 = vsel %vm1208_vm0, %v1191_v62, %v1192_v21  ;;  %v1193_v41 = vrot.slane %v844_v28, 1 }
 0x11a   : > { %4905 = vst [vmem:[#allocation14_spill] sm:$0xff] %v3794_v26  ;;  %v2293_v33 = vadd.f32 %v2292_v24, %v2291_v15  ;;  %v2296_v34 = vadd.f32 %v3794_v26, %v3791_v25  ;;  %v1306_v36 = vmul.f32 %v3771_v7, %v1222_v32  ;;  %v1176_v49 = vmax.f32 %v1160_v20, 0.0  ;;  %v3824_v15 = vld [vmem:[%s4854_s2 + $0xa8] sm:$0xff]  }
 0x11b   : > { %v1605_v43 = vrot.slane %v1604_v29, 2  ;;  %v1177_v50 = vmax.f32 %v1161_v31, 0.0  ;;  %v1221_v59 = vsel %vm1208_vm0, %v1192_v21, %v1193_v41  ;;  %v1357_v13 = vmax.f32 %v3797_v30, 0.0  ;;  %2866 = vmatpush3.bf16.msra.mxu0 %v3824_v15 }
 0x11c   : > { %v2294_v51 = vrot.slane %v2293_v33, 1  ;;  %v2297_v53 = vrot.slane %v2296_v34, 4  ;;  %v1322_v54 = vadd.f32 %v1306_v36, %v832_v56  ;;  %v1307_v1 = vmul.f32 %v3707_v37, %v1221_v59  ;;  %2867 = vmatprep.subr.bf16.mxu0 %v4862_v35 }
 0x11d   : > { %v1606_v62 = vmax.f32 %v1604_v29, %v1605_v43  ;;  %v1623_v63 = vmax.f32 %v1176_v49, %v1177_v50  ;;  %v3814_v0 = vpack.c.bf16 %v1177_v50, %v1176_v49  ;;  %v735_v3 = vpop.f32.mrb[8].mxu0  ;;  %v3817_v4 = vpop.f32.mrb[8].mxu1 }
 0x11e   : > { %v2295_v56 = vadd.f32 %v2294_v51, %v2293_v33  ;;  %v2298_v5 = vadd.f32 %v2297_v53, %v2296_v34  ;;  %v737_v6 = vpop.f32.mrb[9].mxu0  ;;  %v850_v10 = vpop.f32.mrb[9].mxu1  ;;  %v1342_v17 = vadd.f32 %v3783_v12, %v1322_v54  ;;  %v3827_v18 = vadd.f32 %v1307_v1, %v838_v14 }
 0x11f   : > { %v1624_v16 = vrot.slane %v1623_v63, 4  ;;  %v1162_v19 = vadd.f32 %v3740_v45, %v737_v6  ;;  %v739_v20 = vpop.f32.mrb[10].mxu0  ;;  %v3830_v21 = vpop.f32.mrb[10].mxu1  ;;  %v3834_v24 = vadd.f32 %v3743_v46, %v735_v3  ;;  %v1194_v27 = vrot.slane %v850_v10, 1 }
 0x120   : > { %v2299_v22 = vrot.slane %v2298_v5, 2  ;;  %v3837_v28 = vadd.f32 %v3743_v46, %v739_v20  ;;  %v741_v29 = vpop.f32.mrb[11].mxu0  ;;  %v3839_v30 = vpop.f32.mrb[11].mxu1  ;;  %v1607_v14 = vrot.slane %v1606_v62, 1  ;;  %v1358_v54 = vmax.f32 %v1342_v17, 0.0 }
 0x121   : > { %4906 = vst [vmem:[#allocation15_spill] sm:$0xff] %v3834_v24  ;;  %v1625_v31 = vmax.f32 %v1623_v63, %v1624_v16  ;;  %v1178_v32 = vmax.f32 %v1162_v19, 0.0  ;;  %v1163_v33 = vadd.f32 %v3740_v45, %v741_v29  ;;  %v1220_v36 = vsel %vm1208_vm0, %v1193_v41, %v1194_v27  ;;  %v3850_v3 = vpop.permute.xlu0 %1247 }
 0x122   : > { %4907 = vst [vmem:[#allocation16_spill] sm:$0xff] %v3837_v28  ;;  %v2300_v34 = vadd.f32 %v2299_v22, %v2298_v5  ;;  %v2303_v43 = vadd.f32 %v3837_v28, %v3834_v24  ;;  %v1195_v49 = vrot.slane %v3839_v30, 1  ;;  %v1308_v51 = vmul.f32 %v3722_v40, %v1220_v36  ;;  %4908 = vst [vmem:[#allocation17_spill] sm:$0xff] %v3850_v3  ;;  %v3854_v5 = vpop.permute.xlu1 %1267 }
 0x123   : > { %v1626_v50 = vrot.slane %v1625_v31, 2  ;;  %v1179_v53 = vmax.f32 %v1163_v33, 0.0  ;;  %v2346_v59 = vmul.f32 0.0625, %v2295_v56  ;;  %4909 = vst [vmem:[#allocation18_spill] sm:$0xff] %v3854_v5  ;;  %v3864_v56 = vld [vmem:[%s4854_s2 + $0xb0] sm:$0xff]   ;;  %v1609_v30 = vmax.f32 %v1357_v13, %v1358_v54 }
 0x124   : > { %v2301_v63 = vrot.slane %v2300_v34, 1  ;;  %v2304_v1 = vrot.slane %v2303_v43, 4  ;;  %v1219_v41 = vsel %vm1208_vm0, %v1194_v27, %v1195_v49  ;;  %v1324_v10 = vadd.f32 %v1308_v51, %v3787_v23  ;;  %2868 = vmatpush3.bf16.msra.mxu0 %v3864_v56 }
 0x125   : > { %v1627_v6 = vmax.f32 %v1625_v31, %v1626_v50  ;;  %v1644_v16 = vmax.f32 %v1178_v32, %v1179_v53  ;;  %v3857_v19 = vpack.c.bf16 %v1179_v53, %v1178_v32  ;;  %v745_v20 = vpop.f32.mrb[12].mxu0  ;;  %v3859_v17 = vpop.f32.mrb[12].mxu1  ;;  %v1826_v27 = vpack.c.bf16 %v1358_v54, %v1357_v13  ;;  %2869 = vmatprep.subr.bf16.mxu0 %v4862_v35 }
 0x126   : > { %v2302_v22 = vadd.f32 %v2301_v63, %v2300_v34  ;;  %v2305_v29 = vadd.f32 %v2304_v1, %v2303_v43  ;;  %v747_v33 = vpop.f32.mrb[13].mxu0  ;;  %v3866_v36 = vpop.f32.mrb[13].mxu1  ;;  %v1608_v31 = vmax.f32 %v1606_v62, %v1607_v14  ;;  %v3869_v50 = vadd.f32 %v3743_v46, %v745_v20  ;;  %v3877_v34 = vld [vmem:[%s4854_s2 + $0xb8] sm:$0xff]  }
 0x127   : > { %v1628_v23 = vrot.slane %v1627_v6, 1  ;;  %v1645_v32 = vrot.slane %v1644_v16, 4  ;;  %v749_v51 = vpop.f32.mrb[14].mxu0  ;;  %v3871_v53 = vpop.f32.mrb[14].mxu1  ;;  %v1610_v54 = vrot.slane %v1609_v30, 4  ;;  %2076 = vmatprep.mubr.bf16.mxu1 %v1826_v27  ;;  %v1164_v62 = vadd.f32 %v3740_v45, %v747_v33 }
 0x128   : > { %4910 = vst [vmem:[#allocation19_spill] sm:$0xff] %v3869_v50  ;;  %v2347_v13 = vmul.f32 0.0625, %v2302_v22  ;;  %v2306_v43 = vrot.slane %v2305_v29, 2  ;;  %v751_v14 = vpop.f32.mrb[15].mxu0  ;;  %v3880_v63 = vpop.f32.mrb[15].mxu1  ;;  %2077 = vmatmul.mubr.bf16.vlgmr.msra.gmra.mrb[48].mxu1 %v3780_v11  ;;  %v4864_v55 = vrot.slane %v3866_v36, 1  ;;  %v3886_v28 = vadd.f32 %v3743_v46, %v749_v51  ;;  %2870 = vmatpush3.bf16.msra.mxu0 %v3877_v34 }
 0x129   : > { %v1629_v1 = vmax.f32 %v1627_v6, %v1628_v23  ;;  %v1646_v20 = vmax.f32 %v1644_v16, %v1645_v32  ;;  %v1611_v27 = vmax.f32 %v1609_v30, %v1610_v54  ;;  %v1343_v33 = vadd.f32 %v3783_v12, %v3827_v18  ;;  %2915 = vmatpush3.bf16.msra.mxu1 %v3714_v39  ;;  %v3904_v30 = vpop.permute.xlu0 %1407 }
 0x12a   : > { %4911 = vst [vmem:[#allocation20_spill] sm:$0xff] %v3886_v28  ;;  %v2362_v22 = vsel %vm1794_vm1, %v2347_v13, %v2346_v59  ;;  %v2307_v24 = vadd.f32 %v2306_v43, %v2305_v29  ;;  %v1218_v11 = vsel %vm1208_vm0, %v1195_v49, %v4864_v55  ;;  %v2310_v16 = vadd.f32 %v3886_v28, %v3869_v50 }
 0x12b   : > { %v1795_v35 = vsel %vm1794_vm1, %v1629_v1, %v1608_v31  ;;  %v1647_v6 = vrot.slane %v1646_v20, 2  ;;  %v4912_v23 = vmov 0.0   ;;  %v1344_v59 = vadd.f32 %v3783_v12, %v1324_v10  ;;  %4913 = vst [vmem:[#allocation21_spill] sm:$0xff] %v3904_v30  ;;  %v3906_v31 = vpop.permute.xlu1 %1415 }
 0x12c   : > { %2908 = vmatprep.subr.bf16.mxu1 %v4912_v23  ;;  %v2308_v18 = vrot.slane %v2307_v24, 1  ;;  %v1310_v39 = vmul.f32 %v3747_v48, %v1218_v11  ;;  %v1165_v29 = vadd.f32 %v3740_v45, %v751_v14  ;;  %v1180_v49 = vmax.f32 %v1164_v62, 0.0 }
 0x12d   : > { %v1648_v32 = vmax.f32 %v1646_v20, %v1647_v6  ;;  %v2311_v51 = vrot.slane %v2310_v16, 4  ;;  %v1309_v13 = vmul.f32 %v3850_v3, %v1219_v41  ;;  %v755_v43 = vpop.f32.mrb[16].mxu0  ;;  %v3909_v54 = vpop.f32.mrb[16].mxu1  ;;  %v1612_v55 = vrot.slane %v1611_v27, 2  ;;  %2916 = vmatpush3.bf16.msra.mxu1 %v3720_v2 }
 0x12e   : > { %v2309_v1 = vadd.f32 %v2308_v18, %v2307_v24  ;;  %v3912_v10 = vadd.f32 %v1310_v39, %v3830_v21  ;;  %v1181_v11 = vmax.f32 %v1165_v29, 0.0  ;;  %v757_v28 = vpop.f32.mrb[17].mxu0  ;;  %v3914_v14 = vpop.f32.mrb[17].mxu1  ;;  %v1359_v6 = vmax.f32 %v1343_v33, 0.0  ;;  %2909 = vmatprep.subr.bf16.mxu1 %v4912_v23 }
 0x12f   : > { %v1649_v50 = vrot.slane %v1648_v32, 1  ;;  %v2312_v20 = vadd.f32 %v2311_v51, %v2310_v16  ;;  %v1325_v62 = vadd.f32 %v1309_v13, %v3817_v4  ;;  %v759_v41 = vpop.f32.mrb[18].mxu0  ;;  %v3918_v26 = vpop.f32.mrb[18].mxu1  ;;  %v1197_v2 = vrot.slane %v3880_v63, 1 }
 0x130   : > { %v2348_v24 = vmul.f32 0.0625, %v2309_v1  ;;  %v1665_v18 = vmax.f32 %v1180_v49, %v1181_v11  ;;  %v3921_v21 = vpack.c.bf16 %v1181_v11, %v1180_v49  ;;  %v761_v39 = vpop.f32.mrb[19].mxu0  ;;  %v3923_v29 = vpop.f32.mrb[19].mxu1  ;;  %v1360_v58 = vmax.f32 %v1344_v59, 0.0 }
 0x131   : > { %v1650_v25 = vmax.f32 %v1648_v32, %v1649_v50  ;;  %v2313_v4 = vrot.slane %v2312_v20, 2  ;;  %2917 = vmatpush3.bf16.msra.mxu1 %v3736_v44  ;;  %v1613_v13 = vmax.f32 %v1611_v27, %v1612_v55  ;;  %v3935_v50 = vadd.f32 %v3743_v46, %v755_v43  ;;  %v3942_v32 = vpop.permute.xlu0 %1257  ;;  %v3944_v44 = vpop.permute.xlu1 %1419 }
 0x132   : > { %v3927_v16 = vsel %vm1796_vm2, %v2348_v24, %v2362_v22  ;;  %v1666_v33 = vrot.slane %v1665_v18, 4  ;;  %v1630_v49 = vmax.f32 %v1359_v6, %v1360_v58  ;;  %v1829_v1 = vpack.c.bf16 %v1360_v58, %v1359_v6  ;;  %2910 = vmatprep.subr.bf16.mxu1 %v4912_v23  ;;  %4918 = vst [vmem:[#allocation26_spill] sm:$0xff] %v3942_v32 }
 0x133   : > { %4914 = vst [vmem:[#allocation22_spill] sm:$0xff] %v3927_v16  ;;  %v3931_v51 = vsel %vm1796_vm2, %v1650_v25, %v1795_v35  ;;  %4916 = vst [vmem:[#allocation24_spill] sm:$0xff] %v3935_v50  ;;  %v1166_v63 = vadd.f32 %v3740_v45, %v757_v28  ;;  %v1198_v22 = vrot.slane %v3914_v14, 1  ;;  %v3940_v59 = vadd.f32 %v3743_v46, %v759_v41 }
 0x134   : > { %4915 = vst [vmem:[#allocation23_spill] sm:$0xff] %v3931_v51  ;;  %v1667_v35 = vmax.f32 %v1665_v18, %v1666_v33  ;;  %2084 = vmatprep.mubr.bf16.mxu1 %v1829_v1  ;;  %v1167_v55 = vadd.f32 %v3740_v45, %v761_v39  ;;  %v4919_v58 = vrot.slane %v3866_v36, 1  ;;  %v2314_v43 = vadd.f32 %v2313_v4, %v2312_v20 }
 0x135   : > { %4917 = vst [vmem:[#allocation25_spill] sm:$0xff] %v3940_v59  ;;  %v765_v27 = vpop.f32.mrb[20].mxu0  ;;  %v3951_v28 = vpop.f32.mrb[20].mxu1  ;;  %2085 = vmatmul.mubr.bf16.gmra.mrb[52].mxu1 %v3814_v0  ;;  %v1216_v11 = vsel %vm1208_vm0, %v1197_v2, %v1198_v22  ;;  %v2317_v14 = vadd.f32 %v3940_v59, %v3935_v50  ;;  %v1182_v24 = vmax.f32 %v1166_v63, 0.0  ;;  %v1568_v20 = vsub.s32 3, %v3709_v38 }
 0x136   : > { %v1217_v25 = vsel %vm1208_vm0, %v4919_v58, %v1197_v2  ;;  %v767_v6 = vpop.f32.mrb[21].mxu0  ;;  %v3958_v41 = vpop.f32.mrb[21].mxu1  ;;  %v1312_v36 = vmul.f32 %v3773_v8, %v1216_v11  ;;  %v1183_v18 = vmax.f32 %v1167_v55, 0.0  ;;  %2918 = vmatpush3.bf16.msra.mxu1 %v3778_v9  ;;  %v1614_v0 = vrot.slane %v1613_v13, 1 }
 0x137   : > { %v769_v39 = vpop.f32.mrb[22].mxu0  ;;  %v3961_v33 = vpop.f32.mrb[22].mxu1  ;;  %v1345_v2 = vadd.f32 %v3783_v12, %v1325_v62  ;;  %v1311_v4 = vmul.f32 %v3942_v32, %v1217_v25  ;;  %v1199_v1 = vrot.slane %v3923_v29, 1  ;;  %2911 = vmatprep.subr.bf16.mxu1 %v4912_v23  ;;  %v1668_v63 = vrot.slane %v1667_v35, 2 }
 0x138   : > { %v771_v58 = vpop.f32.mrb[23].mxu0  ;;  %v3968_v59 = vpop.f32.mrb[23].mxu1  ;;  %v1631_v55 = vrot.slane %v1630_v49, 4  ;;  %v1328_v11 = vadd.f32 %v1312_v36, %v3871_v53  ;;  %v1686_v50 = vmax.f32 %v1182_v24, %v1183_v18  ;;  %v2315_v57 = vrot.slane %v2314_v43, 1 }
 0x139   : > { %v2318_v16 = vrot.slane %v2317_v14, 4  ;;  %v3972_v9 = vpack.c.bf16 %v1183_v18, %v1182_v24  ;;  %v1327_v62 = vadd.f32 %v1311_v4, %v3859_v17  ;;  %v1215_v25 = vsel %vm1208_vm0, %v1198_v22, %v1199_v1  ;;  %v3981_v8 = vpop.permute.xlu0 %1272  ;;  %v3983_v53 = vpop.permute.xlu1 %1282 }
 0x13a   : > { %v1346_v29 = vadd.f32 %v3783_v12, %v3912_v10  ;;  %2919 = vmatpush3.bf16.msra.mxu1 %v3812_v61  ;;  %v1687_v30 = vrot.slane %v1686_v50, 4  ;;  %v1313_v47 = vmul.f32 %v3854_v5, %v1215_v25  ;;  %4920 = vst [vmem:[#allocation27_spill] sm:$0xff] %v3981_v8  ;;  %4921 = vst [vmem:[#allocation28_spill] sm:$0xff] %v3983_v53  ;;  %v1361_v36 = vmax.f32 %v1345_v2, 0.0 }
 0x13b   : > { %v3986_v24 = vrot.slane %v3729_v42, %v1568_v20  ;;  %2912 = vmatprep.subr.bf16.mxu1 %v4912_v23  ;;  %v3989_v17 = vmax.f32 %v1667_v35, %v1668_v63  ;;  %v1632_v22 = vmax.f32 %v1630_v49, %v1631_v55  ;;  %v3995_v4 = vmax.f32 %v1613_v13, %v1614_v0 }
 0x13c   : > { %v1362_v18 = vmax.f32 %v1346_v29, 0.0  ;;  %v2316_v25 = vadd.f32 %v2315_v57, %v2314_v43  ;;  %v2319_v5 = vadd.f32 %v2318_v16, %v2317_v14  ;;  %v3998_v32 = vadd.f32 %v1313_v47, %v3909_v54 }
 0x13d   : > { %v3991_v10 = vpop.f32.mrb[24].mxu0  ;;  %v3993_v61 = vpop.f32.mrb[24].mxu1  ;;  %4922 = vst [vmem:[#allocation29_spill] sm:$0xff] %v3995_v4  ;;  %v1347_v35 = vadd.f32 %v3783_v12, %v1327_v62  ;;  %v1168_v2 = vadd.f32 %v3740_v45, %v767_v6  ;;  %v1688_v13 = vmax.f32 %v1686_v50, %v1687_v30  ;;  %v4008_v57 = vadd.f32 %v3743_v46, %v765_v27 }
 0x13e   : > { %v777_v42 = vpop.f32.mrb[25].mxu0  ;;  %v4000_v20 = vpop.f32.mrb[25].mxu1  ;;  %v1651_v63 = vmax.f32 %v1361_v36, %v1362_v18  ;;  %v1832_v49 = vpack.c.bf16 %v1362_v18, %v1361_v36  ;;  %2920 = vmatpush3.bf16.msra.mxu1 %v3824_v15  ;;  %v4879_v47 = vrot.slane %v3958_v41, 1  ;;  %v4012_v54 = vadd.f32 %v3743_v46, %v769_v39 }
 0x13f   : > { %v779_v55 = vpop.f32.mrb[26].mxu0  ;;  %v4004_v29 = vpop.f32.mrb[26].mxu1  ;;  %4923 = vst [vmem:[#allocation30_spill] sm:$0xff] %v4008_v57  ;;  %2913 = vmatprep.subr.bf16.mxu1 %v4912_v23  ;;  %v1670_v14 = vrot.slane %v3989_v17, 1  ;;  %v1633_v6 = vrot.slane %v1632_v22, 2  ;;  %v1169_v15 = vadd.f32 %v3740_v45, %v771_v58  ;;  %v2320_v30 = vrot.slane %v2319_v5, 2 }
 0x140   : > { %4924 = vst [vmem:[#allocation31_spill] sm:$0xff] %v4012_v54  ;;  %v781_v16 = vpop.f32.mrb[27].mxu0  ;;  %v4014_v43 = vpop.f32.mrb[27].mxu1  ;;  %v1652_v0 = vrot.slane %v1651_v63, 4  ;;  %2092 = vmatprep.mubr.bf16.mxu1 %v1832_v49  ;;  %v2324_v50 = vadd.f32 %v4012_v54, %v4008_v57  ;;  %v1214_v27 = vsel %vm1208_vm0, %v1199_v1, %v4879_v47  ;;  %v1348_v39 = vadd.f32 %v3783_v12, %v1328_v11 }
 0x141   : > { %2093 = vmatmul.mubr.bf16.gmra.mrb[56].mxu1 %v3857_v19  ;;  %v1184_v36 = vmax.f32 %v1168_v2, 0.0  ;;  %v1185_v18 = vmax.f32 %v1169_v15, 0.0  ;;  %v1314_v49 = vmul.f32 %v3981_v8, %v1214_v27  ;;  %v1689_v58 = vrot.slane %v1688_v13, 2  ;;  %v4029_v48 = vpop.permute.xlu1 %1427 }
 0x142   : > { %v1653_v62 = vmax.f32 %v1651_v63, %v1652_v0  ;;  %2921 = vmatpush3.bf16.msra.mxu1 %v3864_v56  ;;  %v2325_v51 = vrot.slane %v2324_v50, 4  ;;  %v1363_v19 = vmax.f32 %v1347_v35, 0.0  ;;  %v1364_v4 = vmax.f32 %v1348_v39, 0.0  ;;  %4925 = vst [vmem:[#allocation32_spill] sm:$0xff] %v4029_v48 }
 0x143   : > { %2914 = vmatprep.subr.bf16.mxu1 %v4912_v23  ;;  %v4032_v54 = vmax.f32 %v1632_v22, %v1633_v6  ;;  %v1707_v1 = vmax.f32 %v1184_v36, %v1185_v18  ;;  %v4034_v47 = vpack.c.bf16 %v1185_v18, %v1184_v36  ;;  %v1201_v11 = vrot.slane %v3968_v59, 1 }
 0x144   : > { %v1654_v56 = vrot.slane %v1653_v62, 2  ;;  %v1330_v0 = vadd.f32 %v1314_v49, %v3918_v26  ;;  %v1672_v35 = vmax.f32 %v1363_v19, %v1364_v4  ;;  %v1835_v15 = vpack.c.bf16 %v1364_v4, %v1363_v19 }
 0x145   : > { %v4037_v63 = vpop.f32.mrb[28].mxu0  ;;  %v4039_v2 = vpop.f32.mrb[28].mxu1  ;;  %v4046_v22 = vmul.f32 0.0625, %v2316_v25  ;;  %v2321_v6 = vadd.f32 %v2320_v30, %v2319_v5  ;;  %v2326_v36 = vadd.f32 %v2325_v51, %v2324_v50  ;;  %v1708_v18 = vrot.slane %v1707_v1, 4 }
 0x146   : > { %v4042_v27 = vpop.f32.mrb[29].mxu0  ;;  %v4044_v39 = vpop.f32.mrb[29].mxu1  ;;  %2922 = vmatpush3.bf16.msra.mxu1 %v3877_v34  ;;  %v4054_v23 = vmax.f32 %v3989_v17, %v1670_v14  ;;  %v1690_v26 = vmax.f32 %v1688_v13, %v1689_v58  ;;  %2100 = vmatprep.mubr.bf16.mxu1 %v1835_v15  ;;  %v1170_v4 = vadd.f32 %v3740_v45, %v777_v42  ;;  %v1202_v49 = vrot.slane %v4000_v20, 1 }
 0x147   : > { %4926 = vst [vmem:[#allocation33_spill] sm:$0xff] %v4046_v22  ;;  %v4048_v57 = vpop.f32.mrb[30].mxu0  ;;  %v4050_v59 = vpop.f32.mrb[30].mxu1  ;;  %v1709_v51 = vmax.f32 %v1707_v1, %v1708_v18  ;;  %v1673_v30 = vrot.slane %v1672_v35, 4  ;;  %v4064_v50 = vadd.f32 %v3743_v46, %v3991_v10  ;;  %v4067_v34 = vadd.f32 %v3743_v46, %v779_v55 }
 0x148   : > { %4927 = vst [vmem:[#allocation34_spill] sm:$0xff] %v4054_v23  ;;  %v4058_v25 = vpop.f32.mrb[31].mxu0  ;;  %v4060_v5 = vpop.f32.mrb[31].mxu1  ;;  %v1635_v17 = vrot.slane %v4032_v54, 1  ;;  %v1655_v13 = vmax.f32 %v1653_v62, %v1654_v56  ;;  %v1212_v42 = vsel %vm1208_vm0, %v1201_v11, %v1202_v49  ;;  %v1171_v20 = vadd.f32 %v3740_v45, %v781_v16 }
 0x149   : > { %4928 = vst [vmem:[#allocation35_spill] sm:$0xff] %v4064_v50  ;;  %4929 = vst [vmem:[#allocation36_spill] sm:$0xff] %v4067_v34  ;;  %2101 = vmatmul.mubr.bf16.gmra.mrb[60].mxu1 %v3921_v21  ;;  %v4074_v14 = vpop.permute.xlu0 %1277  ;;  %v2322_v58 = vrot.slane %v2321_v6, 1  ;;  %v2327_v19 = vrot.slane %v2326_v36, 2  ;;  %v1316_v10 = vmul.f32 %v3983_v53, %v1212_v42  ;;  %v2331_v55 = vadd.f32 %v4067_v34, %v4064_v50  ;;  %v4083_v56 = vpop.permute.xlu1 %1287 }
 0x14a   : > { %4930 = vst [vmem:[#allocation37_spill] sm:$0xff] %v4074_v14  ;;  %v1691_v1 = vrot.slane %v1690_v26, 1  ;;  %v1186_v15 = vmax.f32 %v1170_v4, 0.0  ;;  %v1187_v18 = vmax.f32 %v1171_v20, 0.0  ;;  %v4931_v62 = vrot.slane %v3958_v41, 1  ;;  %4932 = vst [vmem:[#allocation38_spill] sm:$0xff] %v4083_v56 }
 0x14b   : > { %v1710_v16 = vrot.slane %v1709_v51, 2  ;;  %v1674_v22 = vmax.f32 %v1672_v35, %v1673_v30  ;;  %v4086_v8 = vadd.f32 %v1316_v10, %v3961_v33  ;;  %v1656_v4 = vrot.slane %v1655_v13, 1 }
 0x14c   : > { %v1213_v21 = vsel %vm1208_vm0, %v4931_v62, %v1201_v11  ;;  %v2332_v20 = vrot.slane %v2331_v55, 4  ;;  %v1728_v50 = vmax.f32 %v1186_v15, %v1187_v18  ;;  %v4093_v41 = vpack.c.bf16 %v1187_v18, %v1186_v15 }
 0x14d   : > { %v1315_v42 = vmul.f32 %v4074_v14, %v1213_v21  ;;  %v4089_v53 = vpop.f32.mrb[32].mxu0  ;;  %v4091_v34 = vpop.f32.mrb[32].mxu1  ;;  %v2328_v62 = vadd.f32 %v2327_v19, %v2326_v36  ;;  %v1350_v35 = vadd.f32 %v3783_v12, %v1330_v0  ;;  %v1203_v30 = vrot.slane %v4014_v43, 1 }
 0x14e   : > { %4933 = vst [vmem:[#allocation39_spill] sm:$0xff] %v4089_v53  ;;  %v4095_v23 = vpop.f32.mrb[33].mxu0  ;;  %v4097_v11 = vpop.f32.mrb[33].mxu1  ;;  %v4107_v14 = vmax.f32 %v4032_v54, %v1635_v17  ;;  %v4109_v15 = vadd.f32 %v2322_v58, %v2321_v6  ;;  %v1729_v18 = vrot.slane %v1728_v50, 4  ;;  %v1711_v43 = vmax.f32 %v1709_v51, %v1710_v16 }
 0x14f   : > { %4934 = vst [vmem:[#allocation40_spill] sm:$0xff] %v4095_v23  ;;  %v1331_v33 = vadd.f32 %v1315_v42, %v3951_v28  ;;  %v4102_v10 = vpop.f32.mrb[34].mxu0  ;;  %v4104_v21 = vpop.f32.mrb[34].mxu1  ;;  %v1349_v23 = vadd.f32 %v3783_v12, %v3998_v32  ;;  %v4117_v28 = vmax.f32 %v1690_v26, %v1691_v1  ;;  %v1675_v19 = vrot.slane %v1674_v22, 2 }
 0x150   : > { %4935 = vst [vmem:[#allocation41_spill] sm:$0xff] %v4107_v14  ;;  %4936 = vst [vmem:[#allocation42_spill] sm:$0xff] %v4109_v15  ;;  %v4113_v36 = vpop.f32.mrb[35].mxu0  ;;  %v4115_v0 = vpop.f32.mrb[35].mxu1  ;;  %v1211_v42 = vsel %vm1208_vm0, %v1202_v49, %v1203_v30  ;;  %v4121_v48 = vmax.f32 %v1655_v13, %v1656_v4  ;;  %v2333_v54 = vadd.f32 %v2332_v20, %v2331_v55  ;;  %v2329_v58 = vrot.slane %v2328_v62, 1 }
 0x151   : > { %4937 = vst [vmem:[#allocation43_spill] sm:$0xff] %v4117_v28  ;;  %v1317_v6 = vmul.f32 %v4083_v56, %v1211_v42  ;;  %v1365_v17 = vmax.f32 %v1349_v23, 0.0  ;;  %v1730_v15 = vmax.f32 %v1728_v50, %v1729_v18  ;;  %v1366_v32 = vmax.f32 %v1350_v35, 0.0  ;;  %v4128_v26 = vpop.permute.xlu1 %1297  ;;  %v4140_v50 = vpop.permute.xlu0 %1292 }
 0x152   : > { %4938 = vst [vmem:[#allocation44_spill] sm:$0xff] %v4121_v48  ;;  %v4126_v14 = vadd.f32 %v3743_v46, %v4037_v63  ;;  %4940 = vst [vmem:[#allocation46_spill] sm:$0xff] %v4128_v26  ;;  %v1172_v49 = vadd.f32 %v3740_v45, %v4042_v27  ;;  %v1204_v13 = vrot.slane %v4044_v39, 1  ;;  %v4138_v23 = vadd.f32 %v3743_v46, %v4048_v57 }
 0x153   : > { %v4131_v51 = vadd.f32 %v1317_v6, %v3993_v61  ;;  %4942 = vst [vmem:[#allocation48_spill] sm:$0xff] %v4140_v50  ;;  %v1712_v55 = vrot.slane %v1711_v43, 1  ;;  %v1676_v1 = vmax.f32 %v1674_v22, %v1675_v19  ;;  %v1693_v63 = vmax.f32 %v1365_v17, %v1366_v32 }
 0x154   : > { %4939 = vst [vmem:[#allocation45_spill] sm:$0xff] %v4126_v14  ;;  %4941 = vst [vmem:[#allocation47_spill] sm:$0xff] %v4138_v23  ;;  %v1838_v16 = vpack.c.bf16 %v1366_v32, %v1365_v17  ;;  %v2334_v61 = vrot.slane %v2333_v54, 2  ;;  %v2338_v27 = vadd.f32 %v4138_v23, %v4126_v14  ;;  %v1173_v39 = vadd.f32 %v3740_v45, %v4058_v25 }
 0x155   : > { %v4142_v4 = vpop.f32.mrb[36].mxu0  ;;  %v4144_v20 = vpop.f32.mrb[36].mxu1  ;;  %v1205_v46 = vrot.slane %v4060_v5, 1  ;;  %v1731_v35 = vrot.slane %v1730_v15, 2  ;;  %v1351_v18 = vadd.f32 %v3783_v12, %v1331_v33  ;;  %v1694_v19 = vrot.slane %v1693_v63, 4 }
 0x156   : > { %v4152_v57 = vpop.f32.mrb[37].mxu0  ;;  %v4154_v22 = vpop.f32.mrb[37].mxu1  ;;  %2108 = vmatprep.mubr.bf16.mxu1 %v1838_v16  ;;  %v1210_v42 = vsel %vm1208_vm0, %v1203_v30, %v1204_v13  ;;  %v1188_v45 = vmax.f32 %v1172_v49, 0.0  ;;  %v1189_v25 = vmax.f32 %v1173_v39, 0.0  ;;  %v1352_v32 = vadd.f32 %v3783_v12, %v4086_v8 }
 0x157   : > { %v4159_v6 = vpop.f32.mrb[38].mxu0  ;;  %v4161_v17 = vpop.f32.mrb[38].mxu1  ;;  %2109 = vmatmul.mubr.bf16.gmra.mrb[64].mxu1 %v3972_v9  ;;  %v1209_v5 = vsel %vm1208_vm0, %v1204_v13, %v1205_v46  ;;  %v1695_v23 = vmax.f32 %v1693_v63, %v1694_v19  ;;  %v2339_v30 = vrot.slane %v2338_v27, 4  ;;  %v1318_v56 = vmul.f32 %v4140_v50, %v1210_v42 }
 0x158   : > { %v4168_v33 = vpop.f32.mrb[39].mxu0  ;;  %v4170_v16 = vpop.f32.mrb[39].mxu1  ;;  %v1319_v14 = vmul.f32 %v4128_v26, %v1209_v5  ;;  %v4176_v9 = vadd.f32 %v2329_v58, %v2328_v62  ;;  %v1677_v49 = vrot.slane %v1676_v1, 1  ;;  %v1749_v39 = vmax.f32 %v1188_v45, %v1189_v25 }
 0x159   : > { %v4174_v28 = vpop.permute.xlu1 %1302  ;;  %v4178_v13 = vpack.c.bf16 %v1189_v25, %v1188_v45  ;;  %v1696_v48 = vrot.slane %v1695_v23, 2  ;;  %v1334_v3 = vadd.f32 %v1318_v56, %v4004_v29  ;;  %v4944_v63 = vrot.slane %v3750_v52, 1 }
 0x15a   : > { %4943 = vst [vmem:[#allocation49_spill] sm:$0xff] %v4174_v28  ;;  %v4181_v8 = vadd.f32 %v1319_v14, %v4039_v2  ;;  %v4188_v42 = vadd.f32 %v2334_v61, %v2333_v54  ;;  %v1732_v5 = vmax.f32 %v1730_v15, %v1731_v35  ;;  %v1367_v58 = vmax.f32 %v1351_v18, 0.0 }
 0x15b   : > { %v1224_v19 = vsel %vm1208_vm0, %v1205_v46, %v4944_v63  ;;  %v4191_v26 = vmax.f32 %v1711_v43, %v1712_v55  ;;  %v2340_v45 = vadd.f32 %v2339_v30, %v2338_v27  ;;  %v1750_v25 = vrot.slane %v1749_v39, 4 }
 0x15c   : > { %v1320_v62 = vmul.f32 %v4174_v28, %v1224_v19  ;;  %v1368_v50 = vmax.f32 %v1352_v32, 0.0  ;;  %v1697_v29 = vmax.f32 %v1695_v23, %v1696_v48  ;;  %v1354_v52 = vadd.f32 %v3783_v12, %v1334_v3 }
 0x15d   : > { %v4193_v2 = vpop.f32.mrb[40].mxu0  ;;  %v4195_v14 = vpop.f32.mrb[40].mxu1  ;;  %v4893_v54 = vrot.slane %v4089_v53, 7  ;;  %v1504_v27 = vrot.slane %v4091_v34, 1  ;;  %v1374_v46 = vrot.slane %v4102_v10, 7  ;;  %v4210_v48 = vmax.f32 %v1676_v1, %v1677_v49 }
 0x15e   : > { %v1336_v56 = vadd.f32 %v1320_v62, %v4050_v59  ;;  %v4200_v15 = vpop.f32.mrb[41].mxu0  ;;  %v4202_v61 = vpop.f32.mrb[41].mxu1  ;;  %v1714_v43 = vmax.f32 %v1367_v58, %v1368_v50  ;;  %v1841_v55 = vpack.c.bf16 %v1368_v50, %v1367_v58  ;;  %v1733_v59 = vrot.slane %v1732_v5, 1 }
 0x15f   : > { %v4206_v35 = vpop.f32.mrb[42].mxu0  ;;  %v4208_v18 = vpop.f32.mrb[42].mxu1  ;;  %v4894_v23 = vrot.slane %v4097_v11, 1  ;;  %v1751_v50 = vmax.f32 %v1749_v39, %v1750_v25  ;;  %v1404_v34 = vsel %vm1389_vm3, %v4893_v54, %v1374_v46  ;;  %v1505_v10 = vrot.slane %v4104_v21, 1 }
 0x160   : > { %v4214_v32 = vpop.f32.mrb[43].mxu0  ;;  %v4216_v30 = vpop.f32.mrb[43].mxu1  ;;  %v1715_v63 = vrot.slane %v1714_v43, 4  ;;  %2116 = vmatprep.mubr.bf16.mxu1 %v1841_v55  ;;  %v1698_v1 = vrot.slane %v1697_v29, 1  ;;  %v2341_v49 = vrot.slane %v2340_v45, 2  ;;  %v1471_v19 = vmul.f32 %v3807_v60, %v1404_v34 }
 0x161   : > { %2117 = vmatmul.mubr.bf16.gmra.mrb[68].mxu1 %v4034_v47  ;;  %v1503_v62 = vrot.slane %v4115_v0, 1  ;;  %v1530_v39 = vsel %vm1208_vm0, %v1504_v27, %v1505_v10  ;;  %v1353_v25 = vadd.f32 %v3783_v12, %v4131_v51  ;;  %v1370_v55 = vmax.f32 %v1354_v52, 0.0 }
 0x162   : > { %v1716_v58 = vmax.f32 %v1714_v43, %v1715_v63  ;;  %v1356_v54 = vadd.f32 %v3783_v12, %v1336_v56  ;;  %v1487_v21 = vadd.f32 %v1471_v19, %v4113_v36  ;;  %v4240_v47 = vmax.f32 %v1732_v5, %v1733_v59 }
 0x163   : > { %v1531_v3 = vsel %vm1208_vm0, %v1503_v62, %v1504_v27  ;;  %v4238_v60 = vsel %vm1208_vm0, %v4894_v23, %v1503_v62  ;;  %v1752_v0 = vrot.slane %v1751_v50, 2  ;;  %v1369_v51 = vmax.f32 %v1353_v25, 0.0 }
 0x164   : > { %v1535_v43 = vmul.f32 %v1531_v3, %v3771_v7  ;;  %v4247_v36 = vmax.f32 %v1697_v29, %v1698_v1  ;;  %v4249_v63 = vadd.f32 %v2341_v49, %v2340_v45  ;;  %v1375_v27 = vrot.slane %v4142_v4, 7 }
 0x165   : > { %v4243_v52 = vpop.f32.mrb[44].mxu0  ;;  %v4245_v56 = vpop.f32.mrb[44].mxu1  ;;  %v1506_v34 = vrot.slane %v4154_v22, 1  ;;  %v1717_v59 = vrot.slane %v1716_v58, 2  ;;  %v1735_v7 = vmax.f32 %v1369_v51, %v1370_v55  ;;  %v1844_v3 = vpack.c.bf16 %v1370_v55, %v1369_v51 }
 0x166   : > { %v4253_v19 = vpop.f32.mrb[45].mxu0  ;;  %v4255_v5 = vpop.f32.mrb[45].mxu1  ;;  %v4257_v62 = vadd.f32 %v1535_v43, %v1487_v21  ;;  %v1403_v45 = vsel %vm1389_vm3, %v1374_v46, %v1375_v27  ;;  %v1355_v22 = vadd.f32 %v3783_v12, %v4181_v8  ;;  %v1372_v29 = vmax.f32 %v1356_v54, 0.0 }
 0x167   : > { %v4259_v25 = vpop.f32.mrb[46].mxu0  ;;  %v4261_v23 = vpop.f32.mrb[46].mxu1  ;;  %v1529_v4 = vsel %vm1208_vm0, %v1505_v10, %v1506_v34  ;;  %v4273_v21 = vmax.f32 %v1751_v50, %v1752_v0  ;;  %v1736_v55 = vrot.slane %v1735_v7, 4  ;;  %2124 = vmatprep.mubr.bf16.mxu1 %v1844_v3  ;;  %v1508_v43 = vrot.slane %v4144_v20, 1 }
 0x168   : > { %v4269_v1 = vpop.f32.mrb[47].mxu0  ;;  %v4271_v49 = vpop.f32.mrb[47].mxu1  ;;  %v1472_v51 = vmul.f32 %v3906_v31, %v1403_v45  ;;  %v1536_v46 = vmul.f32 %v1530_v39, %v3707_v37  ;;  %v1371_v10 = vmax.f32 %v1355_v22, 0.0  ;;  %v1376_v12 = vrot.slane %v4159_v6, 7 }
 0x169   : > { %2125 = vmatmul.mubr.bf16.gmra.mrb[72].mxu1 %v4093_v41  ;;  %v1509_v8 = vrot.slane %v4161_v17, 1  ;;  %v1718_v54 = vmax.f32 %v1716_v58, %v1717_v59  ;;  %v1737_v28 = vmax.f32 %v1735_v7, %v1736_v55  ;;  %v1507_v0 = vrot.slane %v4170_v16, 1 }
 0x16a   : > { %v1488_v50 = vadd.f32 %v1472_v51, %v4152_v57  ;;  %v1756_v3 = vmax.f32 %v1371_v10, %v1372_v29  ;;  %v1847_v53 = vpack.c.bf16 %v1372_v29, %v1371_v10  ;;  %v1402_v37 = vsel %vm1389_vm3, %v1375_v27, %v1376_v12 }
 0x16b   : > { %v4285_v31 = vsel %vm1208_vm0, %v1508_v43, %v1509_v8  ;;  %v1754_v41 = vrot.slane %v4273_v21, 1  ;;  %v1738_v20 = vrot.slane %v1737_v28, 2  ;;  %v1473_v17 = vmul.f32 %v3944_v44, %v1402_v37  ;;  %v4946_v37 = vld [vmem:[#allocation32_spill] sm:$0xff] }
 0x16c   : > { %v1552_v6 = vadd.f32 %v1536_v46, %v1488_v50  ;;  %v1757_v16 = vrot.slane %v1756_v3, 4  ;;  %2132 = vmatprep.mubr.bf16.mxu1 %v1847_v53  ;;  %v1527_v58 = vsel %vm1208_vm0, %v1507_v0, %v1508_v43  ;;  %v1528_v39 = vsel %vm1208_vm0, %v1506_v34, %v1507_v0  ;;  %v1424_v53 = vpop.permute.xlu0 %1423  ;;  %v4945_v50 = vld [vmem:[#allocation17_spill] sm:$0xff] }
 0x16d   : > { %v4291_v57 = vpop.f32.mrb[48].mxu0  ;;  %v1377_v27 = vrot.slane %v4193_v2, 7  ;;  %v1719_v7 = vrot.slane %v1718_v54, 1  ;;  %v1489_v44 = vadd.f32 %v1473_v17, %v4168_v33  ;;  %v1537_v22 = vmul.f32 %v1529_v4, %v3722_v40 }
 0x16e   : > { %v4298_v59 = vpop.f32.mrb[49].mxu0  ;;  %v4301_v45 = vadd.f32 %v3986_v24, %v1552_v6  ;;  %v1739_v55 = vmax.f32 %v1737_v28, %v1738_v20  ;;  %v1758_v43 = vmax.f32 %v1756_v3, %v1757_v16  ;;  %v1510_v34 = vrot.slane %v4202_v61, 1  ;;  %v4947_v6 = vld [vmem:[#allocation9_spill] sm:$0xff] }
 0x16f   : > { %v4305_v29 = vpop.f32.mrb[50].mxu0  ;;  %v1378_v2 = vrot.slane %v4206_v35, 7  ;;  %v1553_v10 = vadd.f32 %v1537_v22, %v1489_v44  ;;  %v1538_v33 = vmul.f32 %v1528_v39, %v4945_v50  ;;  %v1401_v40 = vsel %vm1389_vm3, %v1376_v12, %v1377_v27 }
 0x170   : > { %v4309_v51 = vpop.f32.mrb[51].mxu0  ;;  %v1588_v46 = vmax.f32 %v4301_v45, 0.0  ;;  %v1759_v4 = vrot.slane %v1758_v43, 2  ;;  %v4320_v28 = vsel %vm1208_vm0, %v1509_v8, %v1510_v34  ;;  %v1474_v35 = vmul.f32 %v1424_v53, %v1401_v40  ;;  %v4948_v53 = vld [vmem:[#allocation29_spill] sm:$0xff] }
 0x171   : > { %2133 = vmatmul.mubr.bf16.gmra.mrb[76].mxu1 %v4178_v13  ;;  %v1400_v0 = vsel %vm1389_vm3, %v1377_v27, %v1378_v2  ;;  %v4325_v3 = vadd.f32 %v3986_v24, %v1553_v10  ;;  %v1539_v12 = vmul.f32 %v1527_v58, %v4947_v6  ;;  %v1379_v17 = vrot.slane %v4243_v52, 7  ;;  %v4949_v27 = vld [vmem:[#allocation41_spill] sm:$0xff]  ;;  %v4953_v6 = vld [vmem:[#allocation43_spill] sm:$0xff] }
 0x172   : > { %v1475_v20 = vmul.f32 %v4946_v37, %v1400_v0  ;;  %v1490_v13 = vadd.f32 %v1474_v35, %v4200_v15  ;;  %v1720_v16 = vmax.f32 %v1718_v54, %v1719_v7  ;;  %v1740_v39 = vrot.slane %v1739_v55, 1  ;;  %v4950_v15 = vld [vmem:[#allocation44_spill] sm:$0xff] }
 0x173   : > { %v1760_v44 = vmax.f32 %v1758_v43, %v1759_v4  ;;  %v1589_v8 = vmax.f32 %v4325_v3, 0.0  ;;  %v1808_v10 = vsel %vm1794_vm1, %v4949_v27, %v4948_v53  ;;  %v1755_v50 = vmax.f32 %v4273_v21, %v1754_v41  ;;  %v4951_v41 = vld [vmem:[#allocation23_spill] sm:$0xff] }
 0x174   : > { %v1491_v22 = vadd.f32 %v1475_v20, %v4214_v32  ;;  %v4339_v58 = vadd.f32 %v1538_v33, %v1490_v13  ;;  %v1741_v52 = vmax.f32 %v1739_v55, %v1740_v39  ;;  %v1809_v54 = vsel %vm1796_vm2, %v4950_v15, %v1808_v10  ;;  %v4952_v33 = vld [vmem:[#allocation34_spill] sm:$0xff] }
 0x175   : > { %v4337_v40 = vpop.f32.mrb[52].mxu0  ;;  %v1761_v0 = vrot.slane %v1760_v44, 1  ;;  %v4349_v32 = vmax.f32 %v1588_v46, %v1589_v8  ;;  %v1810_v21 = vsel %vm1798_vm4, %v4210_v48, %v1809_v54  ;;  %v1799_v55 = vsel %vm1798_vm4, %v4952_v33, %v4951_v41  ;;  %v4955_v15 = vld [vmem:[#allocation42_spill] sm:$0xff]  ;;  %v1436_v54 = vpop.permute.xlu1 %1435 }
 0x176   : > { %v4343_v7 = vpop.f32.mrb[53].mxu0  ;;  %v4351_v43 = vadd.f32 %v1539_v12, %v1491_v22  ;;  %v1512_v35 = vrot.slane %v4195_v14, 1  ;;  %v1811_v20 = vsel %vm1800_vm5, %v4247_v36, %v1810_v21  ;;  %v1801_v13 = vsel %vm1800_vm5, %v4953_v6, %v1799_v55  ;;  %v4956_v21 = vld [vmem:[#allocation26_spill] sm:$0xff] }
 0x177   : > { %v4358_v4 = vpop.f32.mrb[54].mxu0  ;;  %v1762_v37 = vmax.f32 %v1760_v44, %v1761_v0  ;;  %v4954_v48 = vrot.slane %v4188_v42, 1  ;;  %v1812_v22 = vsel %vm1802_vm6, %v1720_v16, %v1811_v20  ;;  %v1803_v53 = vsel %vm1802_vm6, %v4191_v26, %v1801_v13  ;;  %v1432_v44 = vpop.permute.xlu0 %1431 }
 0x178   : > { %v4365_v12 = vpop.f32.mrb[55].mxu0  ;;  %v1380_v14 = vrot.slane %v4259_v25, 7  ;;  %v1813_v27 = vsel %vm1804_vm7, %v1741_v52, %v1812_v22  ;;  %v1805_v36 = vsel %vm1804_vm7, %v4240_v47, %v1803_v53  ;;  %v1513_v10 = vrot.slane %v4208_v18, 1 }
 0x179   : > { %v2337_v39 = vadd.f32 %v4954_v48, %v4188_v42  ;;  %v1399_v0 = vsel %vm1389_vm3, %v1378_v2, %v1379_v17  ;;  %v4381_v42 = vmul.f32 0.0625, %v4955_v15  ;;  %v2343_v16 = vrot.slane %v4249_v63, 1  ;;  %v4957_v2 = vld [vmem:[#allocation37_spill] sm:$0xff] }
 0x17a   : > { %v1814_v26 = vsel %vm1806_vm8, %v1762_v37, %v1813_v27  ;;  %v1807_v25 = vsel %vm1806_vm8, %v1755_v50, %v1805_v36  ;;  %v1540_v52 = vmul.f32 %v4285_v31, %v4956_v21  ;;  %v1522_v18 = vsel %vm1208_vm0, %v1512_v35, %v1513_v10 }
 0x17b   : > { %v1850_v41 = vpack.c.bf16 %v1814_v26, %v1814_v26  ;;  %v1476_v47 = vmul.f32 %v1432_v44, %v1399_v0  ;;  %v1849_v33 = vpack.c.bf16 %v1807_v25, %v1807_v25  ;;  %v4391_v55 = vmul.f32 %v1522_v18, %v4957_v2  ;;  %v4958_v44 = vld [vmem:[#allocation12_spill] sm:$0xff]  ;;  %v1440_v0 = vpop.permute.xlu1 %1439  ;;  %v1444_v25 = vpop.permute.xlu0 %1443 }
 0x17c   : > { %v1511_v20 = vrot.slane %v4216_v30, 1  ;;  %v1398_v37 = vsel %vm1389_vm3, %v1379_v17, %v1380_v14  ;;  %v4399_v50 = vmul.f32 0.0625, %v4176_v9  ;;  %v4401_v31 = vmul.f32 0.0625, %v2337_v39 }
 0x17d   : > { %v4396_v6 = vpop.f32.mrb[56].mxu0  ;;  %2140 = vmatprep.mubr.bf16.mxu1 %v1850_v41  ;;  %v1492_v13 = vadd.f32 %v1476_v47, %v4253_v19  ;;  %v1477_v48 = vmul.f32 %v1436_v54, %v1398_v37  ;;  %v1381_v9 = vrot.slane %v4291_v57, 7  ;;  %v1514_v39 = vrot.slane %v4255_v5, 1  ;;  %v4960_v54 = vld [vmem:[#allocation8_spill] sm:$0xff]  ;;  %v4963_v37 = vld [vmem:[#allocation27_spill] sm:$0xff] }
 0x17e   : > { %v4404_v22 = vpop.f32.mrb[57].mxu0  ;;  %2141 = vmatmul.mubr.bf16.gmra.mrb[80].mxu1 %v1849_v33  ;;  %v1523_v30 = vsel %vm1208_vm0, %v1511_v20, %v1512_v35  ;;  %v1524_v17 = vsel %vm1208_vm0, %v1510_v34, %v1511_v20  ;;  %v4417_v19 = vadd.f32 %v2343_v16, %v4249_v63  ;;  %v1541_v27 = vmul.f32 %v4320_v28, %v4958_v44  ;;  %v4959_v28 = vld [vmem:[#allocation28_spill] sm:$0xff] }
 0x17f   : > { %v4414_v53 = vpop.f32.mrb[58].mxu0  ;;  %v1556_v36 = vadd.f32 %v1540_v52, %v1492_v13  ;;  %v1493_v35 = vadd.f32 %v1477_v48, %v4269_v1  ;;  %v1516_v34 = vrot.slane %v4245_v56, 1  ;;  %v1521_v57 = vsel %vm1208_vm0, %v1513_v10, %v1514_v39  ;;  %v4962_v52 = vld [vmem:[#allocation18_spill] sm:$0xff]  ;;  %v1448_v47 = vpop.permute.xlu1 %1447 }
 0x180   : > { %v4422_v61 = vpop.f32.mrb[59].mxu0  ;;  %v1517_v5 = vrot.slane %v4261_v23, 1  ;;  %v1382_v15 = vrot.slane %v4305_v29, 7  ;;  %v1545_v26 = vmul.f32 %v1521_v57, %v4959_v28  ;;  %v1515_v1 = vrot.slane %v4271_v49, 1  ;;  %v1452_v44 = vpop.permute.xlu0 %1451 }
 0x181   : > { %v4430_v63 = vadd.f32 %v3986_v24, %v1556_v36  ;;  %v1557_v16 = vadd.f32 %v1541_v27, %v1493_v35  ;;  %v4436_v21 = vmul.f32 %v4238_v60, %v4960_v54  ;;  %v4961_v23 = vrot.slane %v4097_v11, 1 }
 0x182   : > { %v4440_v56 = vsel %vm1208_vm0, %v1516_v34, %v1517_v5  ;;  %v1397_v10 = vsel %vm1389_vm3, %v1380_v14, %v1381_v9  ;;  %v4452_v49 = vadd.f32 %v3986_v24, %v4257_v62  ;;  %v1638_v60 = vrot.slane %v4349_v32, 4 }
 0x183   : > { %v4446_v29 = vsel %vm1208_vm0, %v1517_v5, %v4961_v23  ;;  %v1542_v41 = vmul.f32 %v1524_v17, %v4962_v52  ;;  %v4457_v18 = vadd.f32 %v3986_v24, %v1557_v16  ;;  %v1519_v11 = vsel %vm1208_vm0, %v1515_v1, %v1516_v34 }
 0x184   : > { %v1520_v33 = vsel %vm1208_vm0, %v1514_v39, %v1515_v1  ;;  %v1478_v2 = vmul.f32 %v1440_v0, %v1397_v10  ;;  %v1396_v14 = vsel %vm1389_vm3, %v1381_v9, %v1382_v15  ;;  %v1592_v20 = vmax.f32 %v4430_v63, 0.0  ;;  %v1460_v10 = vpop.permute.xlu0 %1459 }
 0x185   : > { %v4465_v62 = vpop.f32.mrb[60].mxu0  ;;  %v1543_v13 = vmul.f32 %v1523_v30, %v4963_v37  ;;  %v1593_v48 = vmax.f32 %v4457_v18, 0.0  ;;  %v1479_v17 = vmul.f32 %v1444_v25, %v1396_v14  ;;  %v1383_v35 = vrot.slane %v4337_v40, 7  ;;  %v4964_v30 = vld [vmem:[#allocation38_spill] sm:$0xff]  ;;  %v4965_v37 = vld [vmem:[#allocation48_spill] sm:$0xff] }
 0x186   : > { %v1013_v27 = vpop.f32.mrb[61].mxu0  ;;  %v1494_v36 = vadd.f32 %v1478_v2, %v4298_v59  ;;  %v1384_v39 = vrot.slane %v4358_v4, 7  ;;  %v1385_v0 = vrot.slane %v4396_v6, 7  ;;  %v1546_v57 = vmul.f32 %v1520_v33, %v4964_v30  ;;  %v1456_v59 = vpop.permute.xlu1 %1455 }
 0x187   : > { %v1015_v9 = vpop.f32.mrb[62].mxu0  ;;  %v4478_v34 = vmax.f32 %v1592_v20, %v1593_v48  ;;  %v1495_v5 = vadd.f32 %v1479_v17, %v4309_v51  ;;  %v1386_v16 = vrot.slane %v4414_v53, 7  ;;  %v1395_v4 = vsel %vm1389_vm3, %v1382_v15, %v1383_v35 }
 0x188   : > { %v1017_v28 = vpop.f32.mrb[63].mxu0  ;;  %v1558_v40 = vadd.f32 %v1542_v41, %v1494_v36  ;;  %v1394_v6 = vsel %vm1389_vm3, %v1383_v35, %v1384_v39  ;;  %v1393_v1 = vsel %vm1389_vm3, %v1384_v39, %v1385_v0  ;;  %v1480_v54 = vmul.f32 %v1448_v47, %v1395_v4 }
 0x189   : > { %v1559_v25 = vadd.f32 %v1543_v13, %v1495_v5  ;;  %v1481_v23 = vmul.f32 %v1452_v44, %v1394_v6  ;;  %v1387_v51 = vrot.slane %v4465_v62, 7  ;;  %v1482_v52 = vmul.f32 %v1456_v59, %v1393_v1  ;;  %v4966_v44 = vld [vmem:[#allocation39_spill] sm:$0xff] }
 0x18a   : > { %v4491_v53 = vadd.f32 %v3986_v24, %v1558_v40  ;;  %v1392_v41 = vsel %vm1389_vm3, %v1385_v0, %v1386_v16  ;;  %v1388_v15 = vrot.slane %v1015_v9, 7  ;;  %v1639_v33 = vmax.f32 %v4349_v32, %v1638_v60 }
 0x18b   : > { %v4497_v2 = vadd.f32 %v3986_v24, %v1559_v25  ;;  %v1496_v14 = vadd.f32 %v1480_v54, %v4343_v7  ;;  %v1497_v47 = vadd.f32 %v1481_v23, %v4365_v12  ;;  %v1547_v13 = vmul.f32 %v1519_v11, %v4965_v37  ;;  %v1464_v7 = vpop.permute.xlu1 %1463  ;;  %v4968_v11 = vld [vmem:[#allocation21_spill] sm:$0xff] }
 0x18c   : > { %v1498_v62 = vadd.f32 %v1482_v52, %v4404_v22  ;;  %v1483_v17 = vmul.f32 %v1460_v10, %v1392_v41  ;;  %v4967_v36 = vrot.slane %v4966_v44, 7  ;;  %v1594_v39 = vmax.f32 %v4491_v53, 0.0  ;;  %v4970_v10 = vld [vmem:[#allocation46_spill] sm:$0xff]  ;;  %v4971_v44 = vld [vmem:[#allocation49_spill] sm:$0xff] }
 0x18d   : > { %v1595_v32 = vmax.f32 %v4497_v2, 0.0  ;;  %v1560_v60 = vadd.f32 %v4391_v55, %v1496_v14  ;;  %v1561_v0 = vadd.f32 %v1545_v26, %v1497_v47  ;;  %v1391_v22 = vsel %vm1389_vm3, %v1386_v16, %v1387_v51  ;;  %v4969_v26 = vld [vmem:[#allocation40_spill] sm:$0xff]  ;;  %v1468_v16 = vpop.permute.xlu0 %1467 }
 0x18e   : > { %v1405_v35 = vsel %vm1389_vm3, %v1388_v15, %v4967_v36  ;;  %v1562_v9 = vadd.f32 %v1546_v57, %v1498_v62  ;;  %v1499_v12 = vadd.f32 %v1483_v17, %v4422_v61  ;;  %v1587_v5 = vmax.f32 %v4452_v49, 0.0 }
 0x18f   : > { %v1470_v30 = vmul.f32 %v4968_v11, %v1405_v35  ;;  %v1700_v59 = vmax.f32 %v1594_v39, %v1595_v32  ;;  %v1580_v40 = vadd.f32 %v3986_v24, %v1560_v60  ;;  %v1581_v4 = vadd.f32 %v3986_v24, %v1561_v0 }
 0x190   : > { %v1582_v6 = vadd.f32 %v3986_v24, %v1562_v9  ;;  %v1563_v55 = vadd.f32 %v1547_v13, %v1499_v12  ;;  %v1484_v57 = vmul.f32 %v1464_v7, %v1391_v22  ;;  %v1640_v25 = vrot.slane %v1639_v33, 2 }
 0x191   : > { %v1486_v1 = vadd.f32 %v1470_v30, %v4969_v26  ;;  %v1575_v61 = vadd.f32 %v3986_v24, %v4351_v43  ;;  %v1596_v54 = vmax.f32 %v1580_v40, 0.0  ;;  %v1597_v23 = vmax.f32 %v1581_v4, 0.0 }
 0x192   : > { %v1548_v49 = vmul.f32 %v4440_v56, %v4970_v10  ;;  %v1583_v53 = vadd.f32 %v3986_v24, %v1563_v55  ;;  %v1500_v41 = vadd.f32 %v1484_v57, %v1013_v27  ;;  %v1680_v2 = vrot.slane %v4478_v34, 4  ;;  %v4973_v10 = vld [vmem:[#allocation22_spill] sm:$0xff] }
 0x193   : > { %v1550_v52 = vadd.f32 %v4436_v21, %v1486_v1  ;;  %v1721_v14 = vmax.f32 %v1596_v54, %v1597_v23  ;;  %v1598_v47 = vmax.f32 %v1582_v6, 0.0  ;;  %v1390_v37 = vsel %vm1389_vm3, %v1387_v51, %v1388_v15 }
 0x194   : > { %v1599_v13 = vmax.f32 %v1583_v53, 0.0  ;;  %v1564_v62 = vadd.f32 %v1548_v49, %v1500_v41  ;;  %v1485_v17 = vmul.f32 %v1468_v16, %v1390_v37  ;;  %v1549_v56 = vmul.f32 %v4446_v29, %v4971_v44  ;;  %v4974_v49 = vld [vmem:[#allocation33_spill] sm:$0xff] }
 0x195   : > { %v1570_v43 = vadd.f32 %v3986_v24, %v1550_v52  ;;  %v1701_v36 = vrot.slane %v1700_v59, 4  ;;  %v1830_v21 = vpack.c.bf16 %v1589_v8, %v1588_v46  ;;  %v1722_v27 = vrot.slane %v1721_v14, 4 }
 0x196   : > { %v1742_v35 = vmax.f32 %v1598_v47, %v1599_v13  ;;  %v1501_v0 = vadd.f32 %v1485_v17, %v1017_v28  ;;  %v4972_v51 = vmov 0.0   ;;  %v1591_v15 = vmax.f32 %v1575_v61, 0.0 }
 0x197   : > { %v1586_v60 = vmax.f32 %v1570_v43, 0.0  ;;  %2871 = vmatprep.mubr.msk.bf16.mxu0 %vm3231_vm9, %v4972_v51  ;;  %2899 = vmatprep.mubr.msk.bf16.mxu1 %vm3231_vm9, %v4972_v51  ;;  %v1681_v29 = vmax.f32 %v4478_v34, %v1680_v2  ;;  %v1574_v45 = vadd.f32 %v3986_v24, %v4339_v58  ;;  %v4546_v46 = vpack.c.bf16 %v1593_v48, %v1592_v20 }
 0x198   : > { %v1743_v3 = vrot.slane %v1742_v35, 4  ;;  %v1584_v28 = vadd.f32 %v3986_v24, %v1564_v62  ;;  %v1565_v7 = vadd.f32 %v1549_v56, %v1501_v0  ;;  %v1641_v9 = vmax.f32 %v1639_v33, %v1640_v25 }
 0x199   : > { %v1616_v8 = vmax.f32 %v1586_v60, %v1587_v5  ;;  %v1702_v12 = vmax.f32 %v1700_v59, %v1701_v36  ;;  %v1827_v11 = vpack.c.bf16 %v1587_v5, %v1586_v60  ;;  %v1590_v30 = vmax.f32 %v1574_v45, 0.0 }
 0x19a   : > { %v1723_v22 = vmax.f32 %v1721_v14, %v1722_v27  ;;  %v1585_v40 = vadd.f32 %v3986_v24, %v1565_v7  ;;  %v4550_v58 = vpack.c.bf16 %v1595_v32, %v1594_v39  ;;  %v1682_v63 = vrot.slane %v1681_v29, 2 }
 0x19b   : > { %v1617_v34 = vrot.slane %v1616_v8, 4  ;;  %v1744_v4 = vmax.f32 %v1742_v35, %v1743_v3  ;;  %2872 = vmatmul.mubr.bf16.vlgmr.msra.gmra.mrb[64].mxu0 %v1827_v11  ;;  %v1658_v18 = vmax.f32 %v1590_v30, %v1591_v15  ;;  %v1833_v20 = vpack.c.bf16 %v1591_v15, %v1590_v30 }
 0x19c   : > { %v1600_v6 = vmax.f32 %v1584_v28, 0.0  ;;  %v1601_v55 = vmax.f32 %v1585_v40, 0.0  ;;  %2875 = vmatprep.mubr.msk.bf16.mxu0 %vm3231_vm9, %v4972_v51  ;;  %v1842_v33 = vpack.c.bf16 %v1597_v23, %v1596_v54  ;;  %v1642_v5 = vrot.slane %v1641_v9, 1 }
 0x19d   : > { %v1618_v48 = vmax.f32 %v1616_v8, %v1617_v34  ;;  %v1703_v59 = vrot.slane %v1702_v12, 2  ;;  %v1659_v26 = vrot.slane %v1658_v18, 4  ;;  %v1845_v1 = vpack.c.bf16 %v1599_v13, %v1598_v47 }
 0x19e   : > { %v1724_v57 = vrot.slane %v1723_v22, 2  ;;  %v1763_v39 = vmax.f32 %v1600_v6, %v1601_v55  ;;  %v1848_v32 = vpack.c.bf16 %v1601_v55, %v1600_v6  ;;  %v1745_v25 = vrot.slane %v1744_v4, 2 }
 0x19f   : > { %v1619_v24 = vrot.slane %v1618_v48, 2  ;;  %v1660_v61 = vmax.f32 %v1658_v18, %v1659_v26  ;;  %v2353_v16 = vmul.f32 0.0625, %v4417_v19  ;;  %v2364_v53 = vsel %vm1798_vm4, %v4974_v49, %v4973_v10 }
 0x1a0   : > { %v1683_v52 = vmax.f32 %v1681_v29, %v1682_v63  ;;  %v1764_v2 = vrot.slane %v1763_v39, 4  ;;  %2900 = vmatmul.mubr.bf16.vlgmr.msra.gmra.mrb[84].mxu1 %v1848_v32  ;;  %v2365_v54 = vsel %vm1800_vm5, %v4381_v42, %v2364_v53  ;;  %v1704_v23 = vmax.f32 %v1702_v12, %v1703_v59 }
 0x1a1   : > { %v1620_v41 = vmax.f32 %v1618_v48, %v1619_v24  ;;  %v1661_v14 = vrot.slane %v1660_v61, 2  ;;  %2903 = vmatprep.mubr.msk.bf16.mxu1 %vm3231_vm9, %v4972_v51  ;;  %v2366_v47 = vsel %vm1802_vm6, %v4399_v50, %v2365_v54  ;;  %v1725_v19 = vmax.f32 %v1723_v22, %v1724_v57 }
 0x1a2   : > { %v1765_v13 = vmax.f32 %v1763_v39, %v1764_v2  ;;  %v2367_v43 = vsel %vm1804_vm7, %v4401_v31, %v2366_v47  ;;  %v1746_v17 = vmax.f32 %v1744_v4, %v1745_v25  ;;  %v1643_v42 = vmax.f32 %v1641_v9, %v1642_v5 }
 0x1a3   : > { %v1621_v37 = vrot.slane %v1620_v41, 1  ;;  %2876 = vmatmul.mubr.bf16.gmra.mrb[68].mxu0 %v1830_v21  ;;  %v1662_v62 = vmax.f32 %v1660_v61, %v1661_v14  ;;  %v4567_v44 = vsel %vm1806_vm8, %v2353_v16, %v2367_v43  ;;  %v1684_v56 = vrot.slane %v1683_v52, 1 }
 0x1a4   : > { %2879 = vmatprep.mubr.msk.bf16.mxu0 %vm3231_vm9, %v4972_v51  ;;  %v1766_v27 = vrot.slane %v1765_v13, 2  ;;  %v1705_v50 = vrot.slane %v1704_v23, 1  ;;  %v1726_v60 = vrot.slane %v1725_v19, 1  ;;  %v1747_v21 = vrot.slane %v1746_v17, 1 }
 0x1a5   : > { %v1622_v36 = vmax.f32 %v1620_v41, %v1621_v37  ;;  %v1663_v35 = vrot.slane %v1662_v62, 1  ;;  %v1685_v29 = vmax.f32 %v1683_v52, %v1684_v56 }
 0x1a6   : > { %v1767_v0 = vmax.f32 %v1765_v13, %v1766_v27  ;;  %v1706_v3 = vmax.f32 %v1704_v23, %v1705_v50  ;;  %v1727_v28 = vmax.f32 %v1725_v19, %v1726_v60  ;;  %v1748_v9 = vmax.f32 %v1746_v17, %v1747_v21 }
 0x1a7   : > { %v1815_v15 = vsel %vm1794_vm1, %v1643_v42, %v1622_v36  ;;  %v1664_v31 = vmax.f32 %v1662_v62, %v1663_v35 }
 0x1a8   : > { %v1768_v45 = vrot.slane %v1767_v0, 1 }
 0x1a9   : > { %v1816_v8 = vsel %vm1796_vm2, %v1664_v31, %v1815_v15 }
 0x1aa   : > { %v1817_v7 = vsel %vm1798_vm4, %v1685_v29, %v1816_v8  ;;  %v1769_v11 = vmax.f32 %v1767_v0, %v1768_v45 }
 0x1ab   : > { %2880 = vmatmul.mubr.bf16.gmra.mrb[72].mxu0 %v1833_v20  ;;  %v1818_v12 = vsel %vm1800_vm5, %v1706_v3, %v1817_v7  ;;  %v3131_v7 = vld [vmem:[%s4855_s3] sm:$0x1f] }
 0x1ac   : > { %v1819_v30 = vsel %vm1802_vm6, %v1727_v28, %v1818_v12  ;;  %2883 = vmatprep.mubr.msk.bf16.mxu0 %vm3231_vm9, %v4972_v51  ;;  %v2254_v28 = vsub.s32 4, %v3709_v38 }
 0x1ad   : > { %v1820_v22 = vsel %vm1804_vm7, %v1748_v9, %v1819_v30 }
 0x1ae   : > { %v1821_v34 = vsel %vm1806_vm8, %v1769_v11, %v1820_v22  ;;  %v4616_v9 = vrot.slane %v3131_v7, %v2254_v28  ;;  %v4981_v28 = vld [vmem:[#allocation15_spill] sm:$0xff] }
 0x1af   : > { %v1851_v40 = vpack.c.bf16 %v1821_v34, %v1821_v34 }
 0x1b1   : > { %2904 = vmatmul.mubr.bf16.gmra.mrb[88].mxu1 %v1851_v40 }
 0x1b3   : > { %2884 = vmatmul.mubr.bf16.gmra.mrb[76].mxu0 %v4546_v46 }
 0x1b4   : > { %2887 = vmatprep.mubr.msk.bf16.mxu0 %vm3231_vm9, %v4972_v51 }
 0x1bb   : > { %2888 = vmatmul.mubr.bf16.gmra.mrb[80].mxu0 %v4550_v58 }
 0x1bc   : > { %2891 = vmatprep.mubr.msk.bf16.mxu0 %vm3231_vm9, %v4972_v51 }
 0x1c3   : > { %2892 = vmatmul.mubr.bf16.gmra.mrb[84].mxu0 %v1842_v33 }
 0x1c4   : > { %2895 = vmatprep.mubr.msk.bf16.mxu0 %vm3231_vm9, %v4972_v51 }
 0x1cb   : > { %2896 = vmatmul.mubr.bf16.gmra.mrb[88].mxu0 %v1845_v1 }
 0x1fb   : > { %v2752_v63 = vpop.f32.mrb[48].mxu1 }
 0x1fc   : > { %v2753_v4 = vpop.f32.mrb[49].mxu1 }
 0x1fd   : > { %v2754_v18 = vadd.f32 %v2753_v4, %v2752_v63  ;;  %v2755_v20 = vpop.f32.mrb[50].mxu1 }
 0x1fe   : > { %v2756_v48 = vpop.f32.mrb[51].mxu1 }
 0x1ff   : > { %v2757_v6 = vadd.f32 %v2756_v48, %v2755_v20  ;;  %v4975_v48 = vld [vmem:[#allocation10_spill] sm:$0xff] }
 0x208   : > { %v2758_v46 = vpop.f32.mrb[52].mxu1 }
 0x209   : > { %v2759_v55 = vpop.f32.mrb[53].mxu1 }
 0x20a   : > { %v4588_v5 = vadd.f32 %v2759_v55, %v2758_v46  ;;  %v2761_v59 = vpop.f32.mrb[54].mxu1 }
 0x20b   : > { %v2762_v58 = vpop.f32.mrb[55].mxu1 }
 0x20c   : > { %v4590_v26 = vadd.f32 %v2762_v58, %v2761_v59 }
 0x214   : > { %v2764_v57 = vpop.f32.mrb[56].mxu1 }
 0x215   : > { %v2765_v33 = vpop.f32.mrb[57].mxu1 }
 0x216   : > { %v4592_v24 = vadd.f32 %v2765_v33, %v2764_v57  ;;  %v2767_v51 = vpop.f32.mrb[58].mxu1  ;;  %v4976_v57 = vld [vmem:[#allocation11_spill] sm:$0xff] }
 0x217   : > { %v2768_v1 = vpop.f32.mrb[59].mxu1 }
 0x218   : > { %v4594_v39 = vadd.f32 %v2768_v1, %v2767_v51 }
 0x21c   : > { %v2770_v32 = vpop.f32.mrb[60].mxu1 }
 0x21d   : > { %v2771_v25 = vpop.f32.mrb[61].mxu1 }
 0x21e   : > { %v4596_v61 = vadd.f32 %v2771_v25, %v2770_v32  ;;  %v2773_v16 = vpop.f32.mrb[62].mxu1 }
 0x21f   : > { %v2774_v10 = vpop.f32.mrb[63].mxu1 }
 0x220   : > { %v4598_v49 = vadd.f32 %v2774_v10, %v2773_v16  ;;  %v4977_v10 = vld [vmem:[#allocation45_spill] sm:$0xff] }
 0x22a   : > { %v2776_v53 = vpop.f32.mrb[64].mxu1 }
 0x22b   : > { %v2777_v52 = vpop.f32.mrb[65].mxu1 }
 0x22c   : > { %v4600_v41 = vadd.f32 %v2777_v52, %v2776_v53  ;;  %v2779_v2 = vpop.f32.mrb[66].mxu1 }
 0x22d   : > { %v2780_v54 = vpop.f32.mrb[67].mxu1 }
 0x22e   : > { %v4602_v23 = vadd.f32 %v2780_v54, %v2779_v2 }
 0x234   : > { %v2782_v14 = vpop.f32.mrb[68].mxu1 }
 0x235   : > { %v2783_v47 = vpop.f32.mrb[69].mxu1 }
 0x236   : > { %v4604_v19 = vadd.f32 %v2783_v47, %v2782_v14  ;;  %v2785_v37 = vpop.f32.mrb[70].mxu1 }
 0x237   : > { %v2786_v13 = vpop.f32.mrb[71].mxu1 }
 0x238   : > { %v4606_v43 = vadd.f32 %v2786_v13, %v2785_v37  ;;  %v4978_v37 = vld [vmem:[#allocation47_spill] sm:$0xff] }
 0x23c   : > { %v2788_v62 = vpop.f32.mrb[72].mxu1 }
 0x23d   : > { %v2789_v17 = vpop.f32.mrb[73].mxu1 }
 0x23e   : > { %v4608_v42 = vadd.f32 %v2789_v17, %v2788_v62  ;;  %v2791_v56 = vpop.f32.mrb[74].mxu1  ;;  %v4979_v62 = vld [vmem:[#allocation13_spill] sm:$0xff] }
 0x23f   : > { %v2792_v36 = vpop.f32.mrb[75].mxu1 }
 0x240   : > { %v4610_v27 = vadd.f32 %v2792_v36, %v2791_v56  ;;  %v4980_v56 = vld [vmem:[#allocation14_spill] sm:$0xff] }
 0x244   : > { %v2794_v50 = vpop.f32.mrb[76].mxu1 }
 0x245   : > { %v2795_v35 = vpop.f32.mrb[77].mxu1 }
 0x246   : > { %v2796_v60 = vadd.f32 %v2795_v35, %v2794_v50  ;;  %v2797_v0 = vpop.f32.mrb[78].mxu1 }
 0x247   : > { %v2798_v15 = vpop.f32.mrb[79].mxu1 }
 0x248   : > { %v2799_v31 = vadd.f32 %v2798_v15, %v2797_v0 }
 0x251   : > { %v2800_v21 = vpop.f32.mrb[80].mxu1 }
 0x252   : > { %v2801_v29 = vpop.f32.mrb[81].mxu1 }
 0x253   : > { %v2802_v45 = vadd.f32 %v2801_v29, %v2800_v21  ;;  %v2803_v3 = vpop.f32.mrb[82].mxu1 }
 0x254   : > { %v2804_v8 = vpop.f32.mrb[83].mxu1 }
 0x26e   : > { %v2182_v12 = vpop.f32.mrb[64].mxu0 }
 0x26f   : > { %v2183_v11 = vadd.f32 %v2754_v18, %v2182_v12  ;;  %v2873_v30 = vpop.f32.mrb[65].mxu0 }
 0x270   : > { %v2185_v22 = vpop.f32.mrb[66].mxu0 }
 0x271   : > { %v2256_v34 = vadd.f32 %v4616_v9, %v2183_v11  ;;  %v2186_v40 = vadd.f32 %v2757_v6, %v2185_v22  ;;  %v2874_v63 = vpop.f32.mrb[67].mxu0  ;;  %v4982_v22 = vld [vmem:[#allocation16_spill] sm:$0xff] }
 0x273   : > { %v2238_v4 = vpop.f32.mrb[84].mxu1  ;;  %v2257_v20 = vadd.f32 %v4616_v9, %v2186_v40  ;;  %v4621_v46 = vadd.f32 %v2256_v34, %v4975_v48 }
 0x274   : > { %v2239_v38 = vadd.f32 %v2796_v60, %v2238_v4  ;;  %v2901_v55 = vpop.f32.mrb[85].mxu1 }
 0x275   : > { %v2241_v59 = vpop.f32.mrb[86].mxu1  ;;  %v2371_v58 = vmul.f32 %v4621_v46, %v4621_v46  ;;  %v4626_v18 = vadd.f32 %v2257_v20, %v4976_v57 }
 0x276   : > { %v2270_v33 = vadd.f32 %v4616_v9, %v2239_v38  ;;  %v2242_v51 = vadd.f32 %v2799_v31, %v2241_v59  ;;  %v2902_v6 = vpop.f32.mrb[87].mxu1  ;;  %v2190_v1 = vpop.f32.mrb[68].mxu0 }
 0x277   : > { %v2191_v32 = vadd.f32 %v4588_v5, %v2190_v1  ;;  %2387 = vadd.xlane.f32.xlu1 %v2371_v58  ;;  %v2877_v25 = vpop.f32.mrb[69].mxu0  ;;  %v2372_v50 = vmul.f32 %v4626_v18, %v4626_v18  ;;  %v4984_v1 = vld [vmem:[#allocation20_spill] sm:$0xff] }
 0x278   : > { %v2271_v16 = vadd.f32 %v4616_v9, %v2242_v51  ;;  %v4632_v53 = vadd.f32 %v2270_v33, %v4977_v10  ;;  %v2193_v52 = vpop.f32.mrb[70].mxu0  ;;  %v4983_v51 = vld [vmem:[#allocation19_spill] sm:$0xff] }
 0x279   : > { %v2258_v2 = vadd.f32 %v4616_v9, %v2191_v32  ;;  %v2194_v54 = vadd.f32 %v4590_v26, %v2193_v52  ;;  %v2878_v14 = vpop.f32.mrb[71].mxu0 }
 0x27a   : > { %v2385_v47 = vmul.f32 %v4632_v53, %v4632_v53  ;;  %v4639_v13 = vadd.f32 %v2271_v16, %v4978_v37 }
 0x27b   : > { %v2259_v5 = vadd.f32 %v4616_v9, %v2194_v54  ;;  %v4643_v17 = vadd.f32 %v2258_v2, %v4979_v62 }
 0x27c   : > { %2415 = vadd.xlane.f32.xlu0 %v2385_v47  ;;  %v4985_v47 = vld [vmem:[#allocation24_spill] sm:$0xff] }
 0x27d   : > { %v4646_v36 = vadd.f32 %v2259_v5, %v4980_v56  ;;  %v2373_v15 = vmul.f32 %v4643_v17, %v4643_v17  ;;  %v4986_v5 = vld [vmem:[#allocation25_spill] sm:$0xff] }
 0x27e   : > { %v2198_v26 = vpop.f32.mrb[72].mxu0 }
 0x27f   : > { %v2199_v35 = vadd.f32 %v4592_v24, %v2198_v26  ;;  %v2881_v60 = vpop.f32.mrb[73].mxu0  ;;  %v2374_v0 = vmul.f32 %v4646_v36, %v4646_v36 }
 0x280   : > { %2389 = vadd.xlane.f32.xlu0 %v2372_v50  ;;  %v2201_v31 = vpop.f32.mrb[74].mxu0 }
 0x281   : > { %v2260_v21 = vadd.f32 %v4616_v9, %v2199_v35  ;;  %v2202_v29 = vadd.f32 %v4594_v39, %v2201_v31  ;;  %2393 = vadd.xlane.f32.xlu1 %v2374_v0  ;;  %v2882_v3 = vpop.f32.mrb[75].mxu0 }
 0x282   : > { %v4988_v3 = vld [vmem:[#allocation31_spill] sm:$0xff] }
 0x283   : > { %v2261_v8 = vadd.f32 %v4616_v9, %v2202_v29  ;;  %v4659_v7 = vadd.f32 %v2260_v21, %v4981_v28  ;;  %v4987_v21 = vld [vmem:[#allocation30_spill] sm:$0xff] }
 0x284   : > { %2391 = vadd.xlane.f32.xlu0 %v2373_v15  ;;  %v2246_v24 = vpop.f32.mrb[88].mxu1 }
 0x285   : > { %v2247_v12 = vadd.f32 %v2802_v45, %v2246_v24  ;;  %v2905_v11 = vpop.f32.mrb[89].mxu1  ;;  %v2375_v30 = vmul.f32 %v4659_v7, %v4659_v7  ;;  %v4664_v34 = vadd.f32 %v2261_v8, %v4982_v22 }
 0x286   : > { %v2249_v40 = vpop.f32.mrb[90].mxu1  ;;  %v2206_v63 = vpop.f32.mrb[76].mxu0 }
 0x287   : > { %v2288_v39 = vadd.f32 %v4616_v9, %v2247_v12  ;;  %v2207_v4 = vadd.f32 %v4596_v61, %v2206_v63  ;;  %v2906_v20 = vpop.f32.mrb[91].mxu1  ;;  %v2885_v48 = vpop.f32.mrb[77].mxu0  ;;  %v2376_v38 = vmul.f32 %v4664_v34, %v4664_v34 }
 0x288   : > { %2395 = vadd.xlane.f32.xlu0 %v2375_v30  ;;  %v2209_v45 = vpop.f32.mrb[78].mxu0  ;;  %v4990_v20 = vld [vmem:[#allocation36_spill] sm:$0xff] }
 0x289   : > { %v2262_v55 = vadd.f32 %v4616_v9, %v2207_v4  ;;  %v2210_v59 = vadd.f32 %v4598_v49, %v2209_v45  ;;  %2397 = vadd.xlane.f32.xlu1 %v2376_v38  ;;  %v2886_v58 = vpop.f32.mrb[79].mxu0  ;;  %v4673_v57 = vadd.f32 %v4567_v44, %v2288_v39  ;;  %v4989_v39 = vld [vmem:[#allocation35_spill] sm:$0xff] }
 0x28b   : > { %v2263_v33 = vadd.f32 %v4616_v9, %v2210_v59  ;;  %v4677_v61 = vadd.f32 %v2262_v55, %v4983_v51 }
 0x28d   : > { %v2377_v6 = vmul.f32 %v4677_v61, %v4677_v61  ;;  %v4682_v32 = vadd.f32 %v2263_v33, %v4984_v1 }
 0x28e   : > { %v2214_v25 = vpop.f32.mrb[80].mxu0 }
 0x28f   : > { %v2215_v16 = vadd.f32 %v4600_v41, %v2214_v25  ;;  %v2889_v49 = vpop.f32.mrb[81].mxu0  ;;  %2399 = vadd.xlane.f32.xlu0 %v2377_v6  ;;  %v2378_v44 = vmul.f32 %v4682_v32, %v4682_v32 }
 0x290   : > { %v2217_v10 = vpop.f32.mrb[82].mxu0 }
 0x291   : > { %v2264_v52 = vadd.f32 %v4616_v9, %v2215_v16  ;;  %v2218_v2 = vadd.f32 %v4602_v23, %v2217_v10  ;;  %2401 = vadd.xlane.f32.xlu1 %v2378_v44  ;;  %v2890_v54 = vpop.f32.mrb[83].mxu0 }
 0x293   : > { %v2265_v14 = vadd.f32 %v4616_v9, %v2218_v2  ;;  %v4691_v37 = vadd.f32 %v2264_v52, %v4985_v47 }
 0x295   : > { %v2379_v41 = vmul.f32 %v4691_v37, %v4691_v37  ;;  %v4696_v62 = vadd.f32 %v2265_v14, %v4986_v5 }
 0x296   : > { %v2222_v56 = vpop.f32.mrb[84].mxu0 }
 0x297   : > { %v2223_v50 = vadd.f32 %v4604_v19, %v2222_v56  ;;  %v2893_v26 = vpop.f32.mrb[85].mxu0  ;;  %2403 = vadd.xlane.f32.xlu0 %v2379_v41  ;;  %v2380_v23 = vmul.f32 %v4696_v62, %v4696_v62 }
 0x298   : > { %v2225_v35 = vpop.f32.mrb[86].mxu0 }
 0x299   : > { %v2266_v60 = vadd.f32 %v4616_v9, %v2223_v50  ;;  %v2226_v0 = vadd.f32 %v4606_v43, %v2225_v35  ;;  %2405 = vadd.xlane.f32.xlu1 %v2380_v23  ;;  %v2894_v15 = vpop.f32.mrb[87].mxu0 }
 0x29b   : > { %v2267_v31 = vadd.f32 %v4616_v9, %v2226_v0  ;;  %v4705_v29 = vadd.f32 %v2266_v60, %v4987_v21 }
 0x29d   : > { %v2381_v19 = vmul.f32 %v4705_v29, %v4705_v29  ;;  %v4710_v8 = vadd.f32 %v2267_v31, %v4988_v3 }
 0x29e   : > { %v2230_v28 = vpop.f32.mrb[88].mxu0 }
 0x29f   : > { %v2231_v24 = vadd.f32 %v4608_v42, %v2230_v28  ;;  %v2897_v12 = vpop.f32.mrb[89].mxu0  ;;  %2407 = vadd.xlane.f32.xlu0 %v2381_v19  ;;  %v2382_v43 = vmul.f32 %v4710_v8, %v4710_v8 }
 0x2a0   : > { %v2233_v11 = vpop.f32.mrb[90].mxu0 }
 0x2a1   : > { %v2268_v30 = vadd.f32 %v4616_v9, %v2231_v24  ;;  %v2234_v22 = vadd.f32 %v4610_v27, %v2233_v11  ;;  %2409 = vadd.xlane.f32.xlu1 %v2382_v43  ;;  %v2898_v40 = vpop.f32.mrb[91].mxu0  ;;  %v2483_v27 = vmul.f32 %v4673_v57, %v4673_v57 }
 0x2a3   : > { %v2269_v63 = vadd.f32 %v4616_v9, %v2234_v22  ;;  %v4719_v4 = vadd.f32 %v2268_v30, %v4989_v39  ;;  %v2386_v9 = vmul.f32 %v4639_v13, %v4639_v13 }
 0x2a5   : > { %v2383_v42 = vmul.f32 %v4719_v4, %v4719_v4  ;;  %v4724_v48 = vadd.f32 %v2269_v63, %v4990_v20 }
 0x2a7   : > { %2411 = vadd.xlane.f32.xlu0 %v2383_v42  ;;  %v2384_v38 = vmul.f32 %v4724_v48, %v4724_v48 }
 0x2a9   : > { %2413 = vadd.xlane.f32.xlu1 %v2384_v38 }
 0x2ab   : > { %2484 = vadd.xlane.f32.xlu0 %v2483_v27 }
 0x2ad   : > { %2417 = vadd.xlane.f32.xlu1 %v2386_v9 }
 0x304   : > { %v2388_v45 = vpop.xlane.xlu1 %2387 }
 0x305   : > { %v2419_v55 = vmax.f32 %v2388_v45, 1e-24 }
 0x307   : > { %3097 = vrsqrt.f32 %v2419_v55 }
 0x309   : > { %v2416_v59 = vpop.xlane.xlu0 %2415 }
 0x30a   : > { %v2433_v58 = vmax.f32 %v2416_v59, 1e-24 }
 0x30c   : > { %3099 = vrsqrt.f32 %v2433_v58 }
 0x30d   : > { %v2390_v33 = vpop.xlane.xlu0 %2389 }
 0x30e   : > { %v2420_v51 = vmax.f32 %v2390_v33, 1e-24  ;;  %v2394_v6 = vpop.xlane.xlu1 %2393 }
 0x30f   : > { %v2422_v1 = vmax.f32 %v2394_v6, 1e-24 }
 0x310   : > { %3101 = vrsqrt.f32 %v2420_v51 }
 0x311   : > { %v3098_v25 = vpop.eup %3097  ;;  %v2392_v16 = vpop.xlane.xlu0 %2391  ;;  %3103 = vrsqrt.f32 %v2422_v1 }
 0x312   : > { %v2451_v49 = vmul.f32 %v3098_v25, %v4621_v46  ;;  %v2421_v44 = vmax.f32 %v2392_v16, 1e-24 }
 0x314   : > { %2467 = vst [vmem:[%s4737_s20] sm:$0xff] %v2451_v49  ;;  %3105 = vrsqrt.f32 %v2421_v44 }
 0x315   : > { %v2396_v10 = vpop.xlane.xlu0 %2395 }
 0x316   : > { %v3100_v52 = vpop.eup %3099  ;;  %v2423_v2 = vmax.f32 %v2396_v10, 1e-24  ;;  %v2398_v54 = vpop.xlane.xlu1 %2397 }
 0x317   : > { %v2465_v14 = vmul.f32 %v3100_v52, %v4632_v53  ;;  %v2424_v47 = vmax.f32 %v2398_v54, 1e-24 }
 0x318   : > { %3107 = vrsqrt.f32 %v2423_v2 }
 0x319   : > { %2481 = vst [vmem:[%s4737_s20 + $0x70] sm:$0xff] %v2465_v14  ;;  %3109 = vrsqrt.f32 %v2424_v47 }
 0x31a   : > { %v3102_v46 = vpop.eup %3101 }
 0x31b   : > { %v3104_v41 = vpop.eup %3103  ;;  %v2452_v5 = vmul.f32 %v3102_v46, %v4626_v18 }
 0x31c   : > { %v2454_v56 = vmul.f32 %v3104_v41, %v4646_v36  ;;  %v2400_v50 = vpop.xlane.xlu0 %2399 }
 0x31d   : > { %2468 = vst [vmem:[%s4737_s20 + $0x8] sm:$0xff] %v2452_v5  ;;  %v2425_v26 = vmax.f32 %v2400_v50, 1e-24 }
 0x31e   : > { %v3106_v23 = vpop.eup %3105  ;;  %2470 = vst [vmem:[%s4737_s20 + $0x18] sm:$0xff] %v2454_v56  ;;  %v2402_v35 = vpop.xlane.xlu1 %2401 }
 0x31f   : > { %v2453_v53 = vmul.f32 %v3106_v23, %v4643_v17  ;;  %3111 = vrsqrt.f32 %v2425_v26  ;;  %v2426_v60 = vmax.f32 %v2402_v35, 1e-24 }
 0x321   : > { %2469 = vst [vmem:[%s4737_s20 + $0x10] sm:$0xff] %v2453_v53  ;;  %3113 = vrsqrt.f32 %v2426_v60 }
 0x322   : > { %v3108_v0 = vpop.eup %3107 }
 0x323   : > { %v3110_v15 = vpop.eup %3109  ;;  %v2455_v18 = vmul.f32 %v3108_v0, %v4659_v7 }
 0x324   : > { %v2456_v36 = vmul.f32 %v3110_v15, %v4664_v34  ;;  %v2404_v31 = vpop.xlane.xlu0 %2403 }
 0x325   : > { %2471 = vst [vmem:[%s4737_s20 + $0x20] sm:$0xff] %v2455_v18  ;;  %v2427_v21 = vmax.f32 %v2404_v31, 1e-24 }
 0x326   : > { %2472 = vst [vmem:[%s4737_s20 + $0x28] sm:$0xff] %v2456_v36  ;;  %v2406_v19 = vpop.xlane.xlu1 %2405 }
 0x327   : > { %3115 = vrsqrt.f32 %v2427_v21  ;;  %v2428_v3 = vmax.f32 %v2406_v19, 1e-24 }
 0x329   : > { %v3112_v17 = vpop.eup %3111  ;;  %3117 = vrsqrt.f32 %v2428_v3 }
 0x32a   : > { %v2457_v28 = vmul.f32 %v3112_v17, %v4677_v61 }
 0x32b   : > { %v3114_v24 = vpop.eup %3113 }
 0x32c   : > { %2473 = vst [vmem:[%s4737_s20 + $0x30] sm:$0xff] %v2457_v28  ;;  %v2458_v7 = vmul.f32 %v3114_v24, %v4682_v32  ;;  %v2408_v12 = vpop.xlane.xlu0 %2407 }
 0x32d   : > { %v2429_v34 = vmax.f32 %v2408_v12, 1e-24 }
 0x32e   : > { %2474 = vst [vmem:[%s4737_s20 + $0x38] sm:$0xff] %v2458_v7  ;;  %v2410_v43 = vpop.xlane.xlu1 %2409 }
 0x32f   : > { %3119 = vrsqrt.f32 %v2429_v34  ;;  %v2430_v11 = vmax.f32 %v2410_v43, 1e-24 }
 0x331   : > { %v3116_v30 = vpop.eup %3115  ;;  %3121 = vrsqrt.f32 %v2430_v11 }
 0x332   : > { %v2459_v22 = vmul.f32 %v3116_v30, %v4691_v37 }
 0x333   : > { %v3118_v40 = vpop.eup %3117 }
 0x334   : > { %2475 = vst [vmem:[%s4737_s20 + $0x40] sm:$0xff] %v2459_v22  ;;  %v2460_v63 = vmul.f32 %v3118_v40, %v4696_v62  ;;  %v2412_v61 = vpop.xlane.xlu0 %2411 }
 0x335   : > { %v2431_v39 = vmax.f32 %v2412_v61, 1e-24 }
 0x336   : > { %2476 = vst [vmem:[%s4737_s20 + $0x48] sm:$0xff] %v2460_v63  ;;  %v2414_v32 = vpop.xlane.xlu1 %2413 }
 0x337   : > { %3123 = vrsqrt.f32 %v2431_v39  ;;  %v2432_v42 = vmax.f32 %v2414_v32, 1e-24 }
 0x338   : > { %v2485_v20 = vpop.xlane.xlu0 %2484 }
 0x339   : > { %v3120_v38 = vpop.eup %3119  ;;  %3125 = vrsqrt.f32 %v2432_v42  ;;  %v2486_v27 = vmax.f32 %v2485_v20, 1e-24 }
 0x33a   : > { %v2461_v37 = vmul.f32 %v3120_v38, %v4705_v29  ;;  %v2418_v9 = vpop.xlane.xlu1 %2417 }
 0x33b   : > { %v3122_v45 = vpop.eup %3121  ;;  %3127 = vrsqrt.f32 %v2486_v27  ;;  %v2434_v62 = vmax.f32 %v2418_v9, 1e-24 }
 0x33c   : > { %2477 = vst [vmem:[%s4737_s20 + $0x50] sm:$0xff] %v2461_v37  ;;  %v2462_v55 = vmul.f32 %v3122_v45, %v4710_v8 }
 0x33d   : > { %3129 = vrsqrt.f32 %v2434_v62 }
 0x33e   : > { %2478 = vst [vmem:[%s4737_s20 + $0x58] sm:$0xff] %v2462_v55 }
 0x341   : > { %v3124_v59 = vpop.eup %3123 }
 0x342   : > { %v2463_v58 = vmul.f32 %v3124_v59, %v4719_v4 }
 0x343   : > { %v3126_v33 = vpop.eup %3125 }
 0x344   : > { %2479 = vst [vmem:[%s4737_s20 + $0x60] sm:$0xff] %v2463_v58  ;;  %v2464_v29 = vmul.f32 %v3126_v33, %v4724_v48 }
 0x345   : > { %v3128_v51 = vpop.eup %3127 }
 0x346   : > { %2480 = vst [vmem:[%s4737_s20 + $0x68] sm:$0xff] %v2464_v29  ;;  %v2488_v8 = vmul.f32 %v3128_v51, %v4673_v57 }
 0x347   : > { %v3130_v4 = vpop.eup %3129 }
 0x348   : > { %v2466_v57 = vmul.f32 %v3130_v4, %v4639_v13  ;;  %2489 = vst [vmem:[%s256_s10] sm:$0xff] %v2488_v8 }
 0x349   : > { %3145 = shalt.err (!%p3142_p3)
}
 0x34a   : > { %s3146_s10 = scalar_lea.hbm %s4776_s18, 128  ;;  %s3150_s19 = scalar_lea.hbm %s4858_s6, 256 }
 0x34b   : > { %p3147_p4 = scmp.ne.s32.totalorder %s4776_s18, %s3146_s10  ;;  %p3151_p9 = scmp.lt.u32.totalorder %s4776_s18, %s4858_s6 }
 0x34c   : > { %p3152_p10 = scmp.lt.u32.totalorder %s3150_s19, %s3146_s10  ;;  %p3154_p12 = scmp.lt.u32.totalorder %s3146_s10, %s4776_s18 }
 0x34d   : > { %p3148_p7 = pnand %p3147_p4, %p3309_p5 }
 0x34e   : > { %p3153_p11 = por %p3152_p10, %p3151_p9 }
 0x34f   : > { %p3149_p8 = pneg %p3148_p7 }
 0x350   : > { %p3155_p13 = por %p3154_p12, %p3153_p11 }
 0x352   : > { %p3156_p0 = pnand %p3155_p13, %p3149_p8 }
 0x354   : > { %3159 = shalt.err (!%p3156_p0)
}
 0x355   : > { %2924 = dma.vmem_to_hbm [thread:$0]  (%p3309_p5), %s4778_s13, 128, %s4776_s18, %s2496_s26   ;;  %2482 = vst [vmem:[%s4737_s20 + $0x78] sm:$0xff] %v2466_v57 }
 0x356   : > { %s2491_s29 = scalar_lea.sflag [#allocation3], %s4733_s28  ;;  %s3160_s11 = scalar_lea.vmem %s4785_s15, 2048 }
 0x357   : > { %p3161_p1 = scmp.ne.s32.totalorder %s4785_s15, %s3160_s11  ;;  %s3233_s16 = smov [#allocation2]  }
 0x358   : > { %s3164_s10 = sshll.u32 %s3233_s16, 4  ;;  %s3165_s10 = int_to_ptr.vmem [resolvable:$false] %s3164_s10 }
 0x359   : > { %p3162_p2 = pnand %p3161_p1, %p3309_p5  ;;  %s3166_s14 = scalar_lea.vmem %s3165_s10, 4096 }
 0x35a   : > { %p3167_p4 = scmp.lt.s32.totalorder %s4785_s15, %s3165_s10  ;;  %p3168_p7 = scmp.lt.s32.totalorder %s3166_s14, %s3160_s11 }
 0x35b   : > { %p3163_p3 = pneg %p3162_p2 }
 0x35c   : > { %p3169_p8 = por %p3168_p7, %p3167_p4 }
 0x35e   : > { %p3170_p9 = pnand %p3169_p8, %p3163_p3 }
 0x360   : > { %3173 = shalt.err (!%p3170_p9)
}
 0x361   : > { %s3174_s20 = scalar_lea.hbm %s4783_s25, 2048  ;;  %s3178_s26 = scalar_lea.hbm %s4857_s5, 4096 }
 0x362   : > { %p3175_p10 = scmp.ne.s32.totalorder %s4783_s25, %s3174_s20  ;;  %p3179_p13 = scmp.lt.u32.totalorder %s4783_s25, %s4857_s5 }
 0x363   : > { %p3180_p0 = scmp.lt.u32.totalorder %s3178_s26, %s3174_s20  ;;  %p3182_p2 = scmp.lt.u32.totalorder %s3174_s20, %s4783_s25 }
 0x364   : > { %p3176_p11 = pnand %p3175_p10, %p3309_p5 }
 0x365   : > { %p3181_p1 = por %p3180_p0, %p3179_p13 }
 0x366   : > { %p3177_p12 = pneg %p3176_p11 }
 0x367   : > { %p3183_p3 = por %p3182_p2, %p3181_p1 }
 0x369   : > { %p3184_p4 = pnand %p3183_p3, %p3177_p12 }
 0x36b   : > { %3187 = shalt.err (!%p3184_p4)
}
 0x36c   : > { %s3234_s12 = smov 128   ;;  %s3235_s9 = smov 8  }
 0x36d   : > { %2923 = dma.vmem_to_hbm [thread:$0]  (%p3309_p5), %s4785_s15, 2048, %s4783_s25, %s2491_s29, %s3234_s12, %s3234_s12, %s3235_s9  }
 0x36e PF: > { %p2934_p7 = scmp.ge.s32.totalorder %s3226_s24, 2  ;;  %s2537_s11 = sand.u32 1, %s3214_s21  }
 0x36f   : > { %s2538_s16 = scalar_lea.sflag [#allocation3], %s2537_s11 }
 0x370   : > { %p2928_p8 = pnand %p2934_p7, %p3313_p6 }
 0x372   : > { %3205 = dma.done.wait (!%p2928_p8), %s2538_s16, 2048  }
 0x373   : > { %3207 = vsyncadd (!%p2928_p8), %s2538_s16, 4294965248  ;;  %s2547_s10 = scalar_lea.sflag [#allocation5], %s2537_s11 }
 0x374   : > { %3209 = dma.done.wait (!%p2928_p8), %s2547_s10, 128  }
 0x375   : > { %3211 = vsyncadd (!%p2928_p8), %s2547_s10, 4294967168  ;;  %p20_p5 = scmp.ge.s32.totalorder %s3296_s27, 4   ;;  %s4991_s21 = smov %s3218_s22 }
 0x376   : > { %s4992_s22 = smov %s3222_s23  ;;  %s4993_s23 = smov %s3307_s30 }
 0x377   : > { %s4994_s24 = smov %s3296_s27  ;;  %22 = sbr.rel (!%p20_p5) target bundleno = 5 (0x5), region = 92 }
 0x37e   :  { %2552 = vsyncpa [#allocation3], 1 }
 0x37f   :  { %2554 = vsyncpa [#allocation3 + $0x1], 1 }
 0x380   :  { %2555 = vsyncpa [#allocation5], 1 }
 0x381   :  { %2557 = vsyncpa [#allocation5 + $0x1], 1 }

</bundles_post_ra>
